<compile_context>
chip_gen: v7x
topology: tpu7x:2x2x1
jax: 0.10.0
libtpu: 0.0.40
codegen_flags: <defaults>
</compile_context>

<pallas_src>
import functools

import jax
import jax.numpy as jnp
import numpy as np
from jax import lax
from jax.experimental import pallas as pl
from jax.experimental.pallas import tpu as pltpu


def _spatial_attention_kernel(w_ref, cmask_ref, x_ref, o_ref, buf_ref, *,
                              block_n, C, H, W, K, pad):
    """Processes `block_n` images per grid step.

    w_ref     : SMEM f32[K*K*2]         flattened (ky, kx, cin); cin0=max, cin1=avg
    cmask_ref : VMEM f32[K, H*W]        per-kx column-validity mask (lane-dense)
    x_ref     : VMEM [block_n, C, H*W]  inputs, lane-dense spatial layout
    o_ref     : VMEM [block_n, C, H*W]
    buf_ref   : VMEM f32[2, BUF]        flat zero-padded pooled maps
    """
    HW = H * W
    DATA = pad * W + pad            # offset of real pooled data inside buf
    inv_c = jnp.float32(1.0 / C)

    # Zero the padded pooled buffer.  Done every step (cheap, a few KiB)
    # instead of `pl.when(program_id == 0)`: with a "parallel" grid axis the
    # second TensorCore's first iteration need not be grid index 0.
    buf_ref[...] = jnp.zeros_like(buf_ref)

    for n in range(block_n):        # static, unrolled; block_n is small
        # ---- channel max / mean, lane-dense, streamed over C in chunks ----
        c_chunk = min(C, 64)
        x_max = None
        x_sum = None
        for c0 in range(0, C, c_chunk):
            c1 = min(C, c0 + c_chunk)
            blk = x_ref[n, c0:c1, :]                                  # [cc, HW]
            bmax = jnp.max(blk, axis=0, keepdims=True)                # [1, HW]
            bsum = jnp.sum(blk.astype(jnp.float32), axis=0, keepdims=True)
            x_max = bmax if x_max is None else jnp.maximum(x_max, bmax)
            x_sum = bsum if x_sum is None else x_sum + bsum
        x_avg = x_sum * inv_c

        # ---- write pooled rows into the flat zero-padded buffer ----
        buf_ref[0:1, DATA:DATA + HW] = x_max.astype(jnp.float32)
        buf_ref[1:2, DATA:DATA + HW] = x_avg

        # ---- 7x7 conv, 2 in-channels -> 1 out-channel, f32 accumulation ----
        # For output flat index i = h*W + w and tap (ky, kx), the source is
        # buf[c, ky*W + kx + i]; rows outside [0, H) land in the zero border,
        # columns outside [0, W) are killed by the per-kx column mask.
        att = jnp.zeros((1, HW), jnp.float32)
        for kx in range(K):
            pm0 = jnp.zeros((1, HW), jnp.float32)   # 4 independent FMA chains
            pm1 = jnp.zeros((1, HW), jnp.float32)
            pa0 = jnp.zeros((1, HW), jnp.float32)
            pa1 = jnp.zeros((1, HW), jnp.float32)
            for ky in range(K):
                s = ky * W + kx
                wm = w_ref[(ky * K + kx) * 2 + 0]
                wa = w_ref[(ky * K + kx) * 2 + 1]
                src_m = buf_ref[0:1, s:s + HW]
                src_a = buf_ref[1:2, s:s + HW]
                if ky % 2 == 0:
                    pm0 = pm0 + src_m * wm
                    pa0 = pa0 + src_a * wa
                else:
                    pm1 = pm1 + src_m * wm
                    pa1 = pa1 + src_a * wa
            att = att + cmask_ref[kx:kx + 1, :] * ((pm0 + pm1) + (pa0 + pa1))

        # ---- inputs * attention map, broadcast over C, lane-dense store ----
        o_ref[n] = (x_ref[n] * att).astype(o_ref.dtype)


def _pick_block_n(n_batch, per_image_bytes):
    """Largest batch-block that amortizes per-step overhead but keeps >=2
    grid steps (so both v7x TensorCores get work) and stays well under VMEM."""
    budget = 2 * 1024 * 1024
    best = 1
    for bn in range(1, n_batch + 1):
        if n_batch % bn != 0:
            continue
        if bn * per_image_bytes > budget:
            continue
        if n_batch >= 2 and n_batch // bn < 2:
            continue
        best = bn
    return best


def spatial_attention_forward(x, w, *, block_n=None):
    """x: [N, C, H, W], w: [K, K, 2] f32 with tap order (ky, kx, cin).

    NOTE: PyTorch Conv2d weight is [1, 2, K, K] (OIHW); callers must pass
    w = weight[0].transpose to (kh, kw, cin), cin 0 = max-pool, 1 = avg-pool.
    """
    N, C, H, W = x.shape
    K = w.shape[0]
    assert w.shape == (K, K, 2), w.shape
    pad = K // 2
    HW = H * W
    buf_len = (H + 2 * pad) * W + 2 * pad

    itemsize = jnp.dtype(x.dtype).itemsize
    if block_n is None:
        block_n = _pick_block_n(N, 2 * C * HW * itemsize)
    assert N % block_n == 0, (N, block_n)

    w_flat = w.reshape(-1).astype(jnp.float32)

    # Column-validity masks (compile-time constants): mask[kx][i] = 1 iff the
    # horizontal tap offset (kx - pad) keeps column (i % W) inside [0, W).
    cols = np.arange(HW) % W
    cmask = np.stack(
        [((cols + (kx - pad) >= 0) & (cols + (kx - pad) < W)) for kx in range(K)]
    ).astype(np.float32)                                            # [K, HW]
    cmask = jnp.asarray(cmask)

    x3 = x.reshape(N, C, HW)      # free metadata reshape; H*W on the lane axis

    kernel = functools.partial(_spatial_attention_kernel, block_n=block_n,
                               C=C, H=H, W=W, K=K, pad=pad)
    cost = pl.CostEstimate(
        flops=N * (3 * C * HW + 4 * K * K * HW),
        transcendentals=0,
        bytes_accessed=2 * N * C * HW * itemsize + (K * K * 2 + K * HW) * 4)

    out3 = pl.pallas_call(
        kernel,
        out_shape=jax.ShapeDtypeStruct((N, C, HW), x.dtype),
        grid_spec=pltpu.PrefetchScalarGridSpec(
            num_scalar_prefetch=0,
            grid=(N // block_n,),
            in_specs=[
                # Conv weights: tiny, scalar-accessed -> SMEM.
                pl.BlockSpec(memory_space=pltpu.MemorySpace.SMEM),
                # Column masks: constant block index -> DMA'd once, stays in VMEM.
                pl.BlockSpec((K, HW), lambda n: (0, 0)),
                # block_n full images per grid step, lane-dense layout.
                pl.BlockSpec((block_n, C, HW), lambda n: (n, 0, 0)),
            ],
            out_specs=pl.BlockSpec((block_n, C, HW), lambda n: (n, 0, 0)),
            scratch_shapes=[pltpu.VMEM((2, buf_len), jnp.float32)],
        ),
        compiler_params=pltpu.CompilerParams(
            dimension_semantics=("parallel",)),
        cost_estimate=cost,
    )(w_flat, cmask, x3)
    return out3.reshape(N, C, H, W)


def spatial_attention_ref(x, w):
    """Pure-JAX reference mirroring the PyTorch forward (NCHW)."""
    pad = w.shape[0] // 2
    x_max = jnp.max(x, axis=1, keepdims=True)
    x_avg = jnp.mean(x, axis=1, keepdims=True)
    pooled = jnp.concatenate([x_max, x_avg], axis=1)        # [N, 2, H, W]
    w_oihw = jnp.transpose(w, (2, 0, 1))[None]              # [1, 2, K, K]
    att = lax.conv_general_dilated(
        pooled, w_oihw, window_strides=(1, 1),
        padding=[(pad, pad), (pad, pad)],
        dimension_numbers=("NCHW", "OIHW", "NCHW"),
        precision=lax.Precision.HIGHEST)
    return x * att


if __name__ == "__main__":
    root = jax.random.PRNGKey(0)
    kx_key, kw_key = jax.random.split(root)

    N, C, H, W, K = 2, 32, 16, 16, 7
    x = jax.random.normal(kx_key, (N, C, H, W), jnp.float32)
    # Conv2d(2, 1, kernel_size=7, padding=3, bias=False) weight, (ky, kx, cin).
    w = jax.random.normal(kw_key, (K, K, 2), jnp.float32) / jnp.sqrt(K * K * 2)

    out = jax.jit(spatial_attention_forward)(x, w)
    jax.block_until_ready(out)
    assert out.shape == (N, C, H, W), out.shape

    ref = spatial_attention_ref(x, w)
    np.testing.assert_allclose(np.asarray(out), np.asarray(ref),
                               atol=1e-4, rtol=1e-4)
    print("KERNEL_OK")
</pallas_src>

<mosaic_0001>
module attributes {stable_mosaic.version = 11 : i64} {
  func.func @_spatial_attention_kernel(%arg0: i32, %arg1: memref<98xf32, #tpu.memory_space<smem>>, %arg2: memref<7x256xf32, #tpu.memory_space<vmem>>, %arg3: memref<1x32x256xf32, #tpu.memory_space<vmem>>, %arg4: memref<1x32x256xf32, #tpu.memory_space<vmem>>, %arg5: memref<2x358xf32, #tpu.memory_space<vmem>>) attributes {dimension_semantics = [#tpu.dimension_semantics<parallel>], iteration_bounds = array<i64: 2>, scalar_prefetch = 0 : i64, scratch_operands = 1 : i64, tpu.core_type = #tpu.core_type<tc>, window_params = [{transform_indices = @transform_0, window_bounds = array<i64: 98>}, {pipeline_mode = #tpu.pipeline_mode<synchronous>, transform_indices = @transform_1, window_bounds = array<i64: 7, 256>}, {transform_indices = @transform_2, window_bounds = array<i64: 1, 32, 256>}, {transform_indices = @transform_3, window_bounds = array<i64: 1, 32, 256>}]} {
    %cst = arith.constant 0.000000e+00 : f32
    %0 = vector.broadcast %cst : f32 to vector<2x358xf32>
    %c0 = arith.constant 0 : index
    %c0_0 = arith.constant 0 : index
    %1 = vector.load %arg5[%c0, %c0_0] : memref<2x358xf32, #tpu.memory_space<vmem>>, vector<2x358xf32>
    tpu.vector_store %arg5[%c0, %c0_0], %0 {strides = array<i32>} : memref<2x358xf32, #tpu.memory_space<vmem>>, vector<2x358xf32>,
    %c0_1 = arith.constant 0 : index
    %c0_2 = arith.constant 0 : index
    %c0_3 = arith.constant 0 : index
    %2 = vector.load %arg3[%c0_1, %c0_2, %c0_3] : memref<1x32x256xf32, #tpu.memory_space<vmem>>, vector<1x32x256xf32>
    %3 = vector.shape_cast %2 : vector<1x32x256xf32> to vector<32x256xf32>
    %cst_4 = arith.constant dense<0xFF800000> : vector<256xf32>
    %4 = vector.multi_reduction <maximumf>, %3, %cst_4 [0] : vector<32x256xf32> to vector<256xf32>
    %5 = vector.shape_cast %4 : vector<256xf32> to vector<1x256xf32>
    %cst_5 = arith.constant dense<0.000000e+00> : vector<256xf32>
    %6 = vector.multi_reduction <add>, %3, %cst_5 [0] : vector<32x256xf32> to vector<256xf32>
    %7 = vector.shape_cast %6 : vector<256xf32> to vector<1x256xf32>
    %cst_6 = arith.constant 3.125000e-02 : f32
    %8 = vector.broadcast %cst_6 : f32 to vector<1x256xf32>
    %9 = arith.mulf %7, %8 : vector<1x256xf32>
    %c0_7 = arith.constant 0 : index
    %c51 = arith.constant 51 : index
    %10 = vector.load %arg5[%c0_7, %c51] : memref<2x358xf32, #tpu.memory_space<vmem>>, vector<1x256xf32>
    tpu.vector_store %arg5[%c0_7, %c51], %5 {strides = array<i32>} : memref<2x358xf32, #tpu.memory_space<vmem>>, vector<1x256xf32>,
    %c1 = arith.constant 1 : index
    %c51_8 = arith.constant 51 : index
    %11 = vector.load %arg5[%c1, %c51_8] : memref<2x358xf32, #tpu.memory_space<vmem>>, vector<1x256xf32>
    tpu.vector_store %arg5[%c1, %c51_8], %9 {strides = array<i32>} : memref<2x358xf32, #tpu.memory_space<vmem>>, vector<1x256xf32>,
    %cst_9 = arith.constant 0.000000e+00 : f32
    %12 = vector.broadcast %cst_9 : f32 to vector<1x256xf32>
    %cst_10 = arith.constant 0.000000e+00 : f32
    %13 = vector.broadcast %cst_10 : f32 to vector<1x256xf32>
    %cst_11 = arith.constant 0.000000e+00 : f32
    %14 = vector.broadcast %cst_11 : f32 to vector<1x256xf32>
    %cst_12 = arith.constant 0.000000e+00 : f32
    %15 = vector.broadcast %cst_12 : f32 to vector<1x256xf32>
    %cst_13 = arith.constant 0.000000e+00 : f32
    %16 = vector.broadcast %cst_13 : f32 to vector<1x256xf32>
    %c0_14 = arith.constant 0 : index
    %17 = memref.load %arg1[%c0_14] : memref<98xf32, #tpu.memory_space<smem>>
    %c1_15 = arith.constant 1 : index
    %18 = memref.load %arg1[%c1_15] : memref<98xf32, #tpu.memory_space<smem>>
    %c0_16 = arith.constant 0 : index
    %c0_17 = arith.constant 0 : index
    %19 = vector.load %arg5[%c0_16, %c0_17] : memref<2x358xf32, #tpu.memory_space<vmem>>, vector<1x256xf32>
    %c1_18 = arith.constant 1 : index
    %c0_19 = arith.constant 0 : index
    %20 = vector.load %arg5[%c1_18, %c0_19] : memref<2x358xf32, #tpu.memory_space<vmem>>, vector<1x256xf32>
    %21 = vector.broadcast %17 : f32 to vector<1x256xf32>
    %22 = arith.mulf %19, %21 : vector<1x256xf32>
    %23 = arith.addf %13, %22 : vector<1x256xf32>
    %24 = vector.broadcast %18 : f32 to vector<1x256xf32>
    %25 = arith.mulf %20, %24 : vector<1x256xf32>
    %26 = arith.addf %15, %25 : vector<1x256xf32>
    %c14 = arith.constant 14 : index
    %27 = memref.load %arg1[%c14] : memref<98xf32, #tpu.memory_space<smem>>
    %c15 = arith.constant 15 : index
    %28 = memref.load %arg1[%c15] : memref<98xf32, #tpu.memory_space<smem>>
    %c0_20 = arith.constant 0 : index
    %c16 = arith.constant 16 : index
    %29 = vector.load %arg5[%c0_20, %c16] : memref<2x358xf32, #tpu.memory_space<vmem>>, vector<1x256xf32>
    %c1_21 = arith.constant 1 : index
    %c16_22 = arith.constant 16 : index
    %30 = vector.load %arg5[%c1_21, %c16_22] : memref<2x358xf32, #tpu.memory_space<vmem>>, vector<1x256xf32>
    %31 = vector.broadcast %27 : f32 to vector<1x256xf32>
    %32 = arith.mulf %29, %31 : vector<1x256xf32>
    %33 = arith.addf %14, %32 : vector<1x256xf32>
    %34 = vector.broadcast %28 : f32 to vector<1x256xf32>
    %35 = arith.mulf %30, %34 : vector<1x256xf32>
    %36 = arith.addf %16, %35 : vector<1x256xf32>
    %c28 = arith.constant 28 : index
    %37 = memref.load %arg1[%c28] : memref<98xf32, #tpu.memory_space<smem>>
    %c29 = arith.constant 29 : index
    %38 = memref.load %arg1[%c29] : memref<98xf32, #tpu.memory_space<smem>>
    %c0_23 = arith.constant 0 : index
    %c32 = arith.constant 32 : index
    %39 = vector.load %arg5[%c0_23, %c32] : memref<2x358xf32, #tpu.memory_space<vmem>>, vector<1x256xf32>
    %c1_24 = arith.constant 1 : index
    %c32_25 = arith.constant 32 : index
    %40 = vector.load %arg5[%c1_24, %c32_25] : memref<2x358xf32, #tpu.memory_space<vmem>>, vector<1x256xf32>
    %41 = vector.broadcast %37 : f32 to vector<1x256xf32>
    %42 = arith.mulf %39, %41 : vector<1x256xf32>
    %43 = arith.addf %23, %42 : vector<1x256xf32>
    %44 = vector.broadcast %38 : f32 to vector<1x256xf32>
    %45 = arith.mulf %40, %44 : vector<1x256xf32>
    %46 = arith.addf %26, %45 : vector<1x256xf32>
    %c42 = arith.constant 42 : index
    %47 = memref.load %arg1[%c42] : memref<98xf32, #tpu.memory_space<smem>>
    %c43 = arith.constant 43 : index
    %48 = memref.load %arg1[%c43] : memref<98xf32, #tpu.memory_space<smem>>
    %c0_26 = arith.constant 0 : index
    %c48 = arith.constant 48 : index
    %49 = vector.load %arg5[%c0_26, %c48] : memref<2x358xf32, #tpu.memory_space<vmem>>, vector<1x256xf32>
    %c1_27 = arith.constant 1 : index
    %c48_28 = arith.constant 48 : index
    %50 = vector.load %arg5[%c1_27, %c48_28] : memref<2x358xf32, #tpu.memory_space<vmem>>, vector<1x256xf32>
    %51 = vector.broadcast %47 : f32 to vector<1x256xf32>
    %52 = arith.mulf %49, %51 : vector<1x256xf32>
    %53 = arith.addf %33, %52 : vector<1x256xf32>
    %54 = vector.broadcast %48 : f32 to vector<1x256xf32>
    %55 = arith.mulf %50, %54 : vector<1x256xf32>
    %56 = arith.addf %36, %55 : vector<1x256xf32>
    %c56 = arith.constant 56 : index
    %57 = memref.load %arg1[%c56] : memref<98xf32, #tpu.memory_space<smem>>
    %c57 = arith.constant 57 : index
    %58 = memref.load %arg1[%c57] : memref<98xf32, #tpu.memory_space<smem>>
    %c0_29 = arith.constant 0 : index
    %c64 = arith.constant 64 : index
    %59 = vector.load %arg5[%c0_29, %c64] : memref<2x358xf32, #tpu.memory_space<vmem>>, vector<1x256xf32>
    %c1_30 = arith.constant 1 : index
    %c64_31 = arith.constant 64 : index
    %60 = vector.load %arg5[%c1_30, %c64_31] : memref<2x358xf32, #tpu.memory_space<vmem>>, vector<1x256xf32>
    %61 = vector.broadcast %57 : f32 to vector<1x256xf32>
    %62 = arith.mulf %59, %61 : vector<1x256xf32>
    %63 = arith.addf %43, %62 : vector<1x256xf32>
    %64 = vector.broadcast %58 : f32 to vector<1x256xf32>
    %65 = arith.mulf %60, %64 : vector<1x256xf32>
    %66 = arith.addf %46, %65 : vector<1x256xf32>
    %c70 = arith.constant 70 : index
    %67 = memref.load %arg1[%c70] : memref<98xf32, #tpu.memory_space<smem>>
    %c71 = arith.constant 71 : index
    %68 = memref.load %arg1[%c71] : memref<98xf32, #tpu.memory_space<smem>>
    %c0_32 = arith.constant 0 : index
    %c80 = arith.constant 80 : index
    %69 = vector.load %arg5[%c0_32, %c80] : memref<2x358xf32, #tpu.memory_space<vmem>>, vector<1x256xf32>
    %c1_33 = arith.constant 1 : index
    %c80_34 = arith.constant 80 : index
    %70 = vector.load %arg5[%c1_33, %c80_34] : memref<2x358xf32, #tpu.memory_space<vmem>>, vector<1x256xf32>
    %71 = vector.broadcast %67 : f32 to vector<1x256xf32>
    %72 = arith.mulf %69, %71 : vector<1x256xf32>
    %73 = arith.addf %53, %72 : vector<1x256xf32>
    %74 = vector.broadcast %68 : f32 to vector<1x256xf32>
    %75 = arith.mulf %70, %74 : vector<1x256xf32>
    %76 = arith.addf %56, %75 : vector<1x256xf32>
    %c84 = arith.constant 84 : index
    %77 = memref.load %arg1[%c84] : memref<98xf32, #tpu.memory_space<smem>>
    %c85 = arith.constant 85 : index
    %78 = memref.load %arg1[%c85] : memref<98xf32, #tpu.memory_space<smem>>
    %c0_35 = arith.constant 0 : index
    %c96 = arith.constant 96 : index
    %79 = vector.load %arg5[%c0_35, %c96] : memref<2x358xf32, #tpu.memory_space<vmem>>, vector<1x256xf32>
    %c1_36 = arith.constant 1 : index
    %c96_37 = arith.constant 96 : index
    %80 = vector.load %arg5[%c1_36, %c96_37] : memref<2x358xf32, #tpu.memory_space<vmem>>, vector<1x256xf32>
    %81 = vector.broadcast %77 : f32 to vector<1x256xf32>
    %82 = arith.mulf %79, %81 : vector<1x256xf32>
    %83 = arith.addf %63, %82 : vector<1x256xf32>
    %84 = vector.broadcast %78 : f32 to vector<1x256xf32>
    %85 = arith.mulf %80, %84 : vector<1x256xf32>
    %86 = arith.addf %66, %85 : vector<1x256xf32>
    %c0_38 = arith.constant 0 : index
    %c0_39 = arith.constant 0 : index
    %87 = vector.load %arg2[%c0_38, %c0_39] : memref<7x256xf32, #tpu.memory_space<vmem>>, vector<1x256xf32>
    %88 = arith.addf %83, %73 : vector<1x256xf32>
    %89 = arith.addf %86, %76 : vector<1x256xf32>
    %90 = arith.addf %88, %89 : vector<1x256xf32>
    %91 = arith.mulf %87, %90 : vector<1x256xf32>
    %92 = arith.addf %12, %91 : vector<1x256xf32>
    %cst_40 = arith.constant 0.000000e+00 : f32
    %93 = vector.broadcast %cst_40 : f32 to vector<1x256xf32>
    %cst_41 = arith.constant 0.000000e+00 : f32
    %94 = vector.broadcast %cst_41 : f32 to vector<1x256xf32>
    %cst_42 = arith.constant 0.000000e+00 : f32
    %95 = vector.broadcast %cst_42 : f32 to vector<1x256xf32>
    %cst_43 = arith.constant 0.000000e+00 : f32
    %96 = vector.broadcast %cst_43 : f32 to vector<1x256xf32>
    %c2 = arith.constant 2 : index
    %97 = memref.load %arg1[%c2] : memref<98xf32, #tpu.memory_space<smem>>
    %c3 = arith.constant 3 : index
    %98 = memref.load %arg1[%c3] : memref<98xf32, #tpu.memory_space<smem>>
    %c0_44 = arith.constant 0 : index
    %c1_45 = arith.constant 1 : index
    %99 = vector.load %arg5[%c0_44, %c1_45] : memref<2x358xf32, #tpu.memory_space<vmem>>, vector<1x256xf32>
    %c1_46 = arith.constant 1 : index
    %c1_47 = arith.constant 1 : index
    %100 = vector.load %arg5[%c1_46, %c1_47] : memref<2x358xf32, #tpu.memory_space<vmem>>, vector<1x256xf32>
    %101 = vector.broadcast %97 : f32 to vector<1x256xf32>
    %102 = arith.mulf %99, %101 : vector<1x256xf32>
    %103 = arith.addf %93, %102 : vector<1x256xf32>
    %104 = vector.broadcast %98 : f32 to vector<1x256xf32>
    %105 = arith.mulf %100, %104 : vector<1x256xf32>
    %106 = arith.addf %95, %105 : vector<1x256xf32>
    %c16_48 = arith.constant 16 : index
    %107 = memref.load %arg1[%c16_48] : memref<98xf32, #tpu.memory_space<smem>>
    %c17 = arith.constant 17 : index
    %108 = memref.load %arg1[%c17] : memref<98xf32, #tpu.memory_space<smem>>
    %c0_49 = arith.constant 0 : index
    %c17_50 = arith.constant 17 : index
    %109 = vector.load %arg5[%c0_49, %c17_50] : memref<2x358xf32, #tpu.memory_space<vmem>>, vector<1x256xf32>
    %c1_51 = arith.constant 1 : index
    %c17_52 = arith.constant 17 : index
    %110 = vector.load %arg5[%c1_51, %c17_52] : memref<2x358xf32, #tpu.memory_space<vmem>>, vector<1x256xf32>
    %111 = vector.broadcast %107 : f32 to vector<1x256xf32>
    %112 = arith.mulf %109, %111 : vector<1x256xf32>
    %113 = arith.addf %94, %112 : vector<1x256xf32>
    %114 = vector.broadcast %108 : f32 to vector<1x256xf32>
    %115 = arith.mulf %110, %114 : vector<1x256xf32>
    %116 = arith.addf %96, %115 : vector<1x256xf32>
    %c30 = arith.constant 30 : index
    %117 = memref.load %arg1[%c30] : memref<98xf32, #tpu.memory_space<smem>>
    %c31 = arith.constant 31 : index
    %118 = memref.load %arg1[%c31] : memref<98xf32, #tpu.memory_space<smem>>
    %c0_53 = arith.constant 0 : index
    %c33 = arith.constant 33 : index
    %119 = vector.load %arg5[%c0_53, %c33] : memref<2x358xf32, #tpu.memory_space<vmem>>, vector<1x256xf32>
    %c1_54 = arith.constant 1 : index
    %c33_55 = arith.constant 33 : index
    %120 = vector.load %arg5[%c1_54, %c33_55] : memref<2x358xf32, #tpu.memory_space<vmem>>, vector<1x256xf32>
    %121 = vector.broadcast %117 : f32 to vector<1x256xf32>
    %122 = arith.mulf %119, %121 : vector<1x256xf32>
    %123 = arith.addf %103, %122 : vector<1x256xf32>
    %124 = vector.broadcast %118 : f32 to vector<1x256xf32>
    %125 = arith.mulf %120, %124 : vector<1x256xf32>
    %126 = arith.addf %106, %125 : vector<1x256xf32>
    %c44 = arith.constant 44 : index
    %127 = memref.load %arg1[%c44] : memref<98xf32, #tpu.memory_space<smem>>
    %c45 = arith.constant 45 : index
    %128 = memref.load %arg1[%c45] : memref<98xf32, #tpu.memory_space<smem>>
    %c0_56 = arith.constant 0 : index
    %c49 = arith.constant 49 : index
    %129 = vector.load %arg5[%c0_56, %c49] : memref<2x358xf32, #tpu.memory_space<vmem>>, vector<1x256xf32>
    %c1_57 = arith.constant 1 : index
    %c49_58 = arith.constant 49 : index
    %130 = vector.load %arg5[%c1_57, %c49_58] : memref<2x358xf32, #tpu.memory_space<vmem>>, vector<1x256xf32>
    %131 = vector.broadcast %127 : f32 to vector<1x256xf32>
    %132 = arith.mulf %129, %131 : vector<1x256xf32>
    %133 = arith.addf %113, %132 : vector<1x256xf32>
    %134 = vector.broadcast %128 : f32 to vector<1x256xf32>
    %135 = arith.mulf %130, %134 : vector<1x256xf32>
    %136 = arith.addf %116, %135 : vector<1x256xf32>
    %c58 = arith.constant 58 : index
    %137 = memref.load %arg1[%c58] : memref<98xf32, #tpu.memory_space<smem>>
    %c59 = arith.constant 59 : index
    %138 = memref.load %arg1[%c59] : memref<98xf32, #tpu.memory_space<smem>>
    %c0_59 = arith.constant 0 : index
    %c65 = arith.constant 65 : index
    %139 = vector.load %arg5[%c0_59, %c65] : memref<2x358xf32, #tpu.memory_space<vmem>>, vector<1x256xf32>
    %c1_60 = arith.constant 1 : index
    %c65_61 = arith.constant 65 : index
    %140 = vector.load %arg5[%c1_60, %c65_61] : memref<2x358xf32, #tpu.memory_space<vmem>>, vector<1x256xf32>
    %141 = vector.broadcast %137 : f32 to vector<1x256xf32>
    %142 = arith.mulf %139, %141 : vector<1x256xf32>
    %143 = arith.addf %123, %142 : vector<1x256xf32>
    %144 = vector.broadcast %138 : f32 to vector<1x256xf32>
    %145 = arith.mulf %140, %144 : vector<1x256xf32>
    %146 = arith.addf %126, %145 : vector<1x256xf32>
    %c72 = arith.constant 72 : index
    %147 = memref.load %arg1[%c72] : memref<98xf32, #tpu.memory_space<smem>>
    %c73 = arith.constant 73 : index
    %148 = memref.load %arg1[%c73] : memref<98xf32, #tpu.memory_space<smem>>
    %c0_62 = arith.constant 0 : index
    %c81 = arith.constant 81 : index
    %149 = vector.load %arg5[%c0_62, %c81] : memref<2x358xf32, #tpu.memory_space<vmem>>, vector<1x256xf32>
    %c1_63 = arith.constant 1 : index
    %c81_64 = arith.constant 81 : index
    %150 = vector.load %arg5[%c1_63, %c81_64] : memref<2x358xf32, #tpu.memory_space<vmem>>, vector<1x256xf32>
    %151 = vector.broadcast %147 : f32 to vector<1x256xf32>
    %152 = arith.mulf %149, %151 : vector<1x256xf32>
    %153 = arith.addf %133, %152 : vector<1x256xf32>
    %154 = vector.broadcast %148 : f32 to vector<1x256xf32>
    %155 = arith.mulf %150, %154 : vector<1x256xf32>
    %156 = arith.addf %136, %155 : vector<1x256xf32>
    %c86 = arith.constant 86 : index
    %157 = memref.load %arg1[%c86] : memref<98xf32, #tpu.memory_space<smem>>
    %c87 = arith.constant 87 : index
    %158 = memref.load %arg1[%c87] : memref<98xf32, #tpu.memory_space<smem>>
    %c0_65 = arith.constant 0 : index
    %c97 = arith.constant 97 : index
    %159 = vector.load %arg5[%c0_65, %c97] : memref<2x358xf32, #tpu.memory_space<vmem>>, vector<1x256xf32>
    %c1_66 = arith.constant 1 : index
    %c97_67 = arith.constant 97 : index
    %160 = vector.load %arg5[%c1_66, %c97_67] : memref<2x358xf32, #tpu.memory_space<vmem>>, vector<1x256xf32>
    %161 = vector.broadcast %157 : f32 to vector<1x256xf32>
    %162 = arith.mulf %159, %161 : vector<1x256xf32>
    %163 = arith.addf %143, %162 : vector<1x256xf32>
    %164 = vector.broadcast %158 : f32 to vector<1x256xf32>
    %165 = arith.mulf %160, %164 : vector<1x256xf32>
    %166 = arith.addf %146, %165 : vector<1x256xf32>
    %c1_68 = arith.constant 1 : index
    %c0_69 = arith.constant 0 : index
    %167 = vector.load %arg2[%c1_68, %c0_69] : memref<7x256xf32, #tpu.memory_space<vmem>>, vector<1x256xf32>
    %168 = arith.addf %163, %153 : vector<1x256xf32>
    %169 = arith.addf %166, %156 : vector<1x256xf32>
    %170 = arith.addf %168, %169 : vector<1x256xf32>
    %171 = arith.mulf %167, %170 : vector<1x256xf32>
    %172 = arith.addf %92, %171 : vector<1x256xf32>
    %cst_70 = arith.constant 0.000000e+00 : f32
    %173 = vector.broadcast %cst_70 : f32 to vector<1x256xf32>
    %cst_71 = arith.constant 0.000000e+00 : f32
    %174 = vector.broadcast %cst_71 : f32 to vector<1x256xf32>
    %cst_72 = arith.constant 0.000000e+00 : f32
    %175 = vector.broadcast %cst_72 : f32 to vector<1x256xf32>
    %cst_73 = arith.constant 0.000000e+00 : f32
    %176 = vector.broadcast %cst_73 : f32 to vector<1x256xf32>
    %c4 = arith.constant 4 : index
    %177 = memref.load %arg1[%c4] : memref<98xf32, #tpu.memory_space<smem>>
    %c5 = arith.constant 5 : index
    %178 = memref.load %arg1[%c5] : memref<98xf32, #tpu.memory_space<smem>>
    %c0_74 = arith.constant 0 : index
    %c2_75 = arith.constant 2 : index
    %179 = vector.load %arg5[%c0_74, %c2_75] : memref<2x358xf32, #tpu.memory_space<vmem>>, vector<1x256xf32>
    %c1_76 = arith.constant 1 : index
    %c2_77 = arith.constant 2 : index
    %180 = vector.load %arg5[%c1_76, %c2_77] : memref<2x358xf32, #tpu.memory_space<vmem>>, vector<1x256xf32>
    %181 = vector.broadcast %177 : f32 to vector<1x256xf32>
    %182 = arith.mulf %179, %181 : vector<1x256xf32>
    %183 = arith.addf %173, %182 : vector<1x256xf32>
    %184 = vector.broadcast %178 : f32 to vector<1x256xf32>
    %185 = arith.mulf %180, %184 : vector<1x256xf32>
    %186 = arith.addf %175, %185 : vector<1x256xf32>
    %c18 = arith.constant 18 : index
    %187 = memref.load %arg1[%c18] : memref<98xf32, #tpu.memory_space<smem>>
    %c19 = arith.constant 19 : index
    %188 = memref.load %arg1[%c19] : memref<98xf32, #tpu.memory_space<smem>>
    %c0_78 = arith.constant 0 : index
    %c18_79 = arith.constant 18 : index
    %189 = vector.load %arg5[%c0_78, %c18_79] : memref<2x358xf32, #tpu.memory_space<vmem>>, vector<1x256xf32>
    %c1_80 = arith.constant 1 : index
    %c18_81 = arith.constant 18 : index
    %190 = vector.load %arg5[%c1_80, %c18_81] : memref<2x358xf32, #tpu.memory_space<vmem>>, vector<1x256xf32>
    %191 = vector.broadcast %187 : f32 to vector<1x256xf32>
    %192 = arith.mulf %189, %191 : vector<1x256xf32>
    %193 = arith.addf %174, %192 : vector<1x256xf32>
    %194 = vector.broadcast %188 : f32 to vector<1x256xf32>
    %195 = arith.mulf %190, %194 : vector<1x256xf32>
    %196 = arith.addf %176, %195 : vector<1x256xf32>
    %c32_82 = arith.constant 32 : index
    %197 = memref.load %arg1[%c32_82] : memref<98xf32, #tpu.memory_space<smem>>
    %c33_83 = arith.constant 33 : index
    %198 = memref.load %arg1[%c33_83] : memref<98xf32, #tpu.memory_space<smem>>
    %c0_84 = arith.constant 0 : index
    %c34 = arith.constant 34 : index
    %199 = vector.load %arg5[%c0_84, %c34] : memref<2x358xf32, #tpu.memory_space<vmem>>, vector<1x256xf32>
    %c1_85 = arith.constant 1 : index
    %c34_86 = arith.constant 34 : index
    %200 = vector.load %arg5[%c1_85, %c34_86] : memref<2x358xf32, #tpu.memory_space<vmem>>, vector<1x256xf32>
    %201 = vector.broadcast %197 : f32 to vector<1x256xf32>
    %202 = arith.mulf %199, %201 : vector<1x256xf32>
    %203 = arith.addf %183, %202 : vector<1x256xf32>
    %204 = vector.broadcast %198 : f32 to vector<1x256xf32>
    %205 = arith.mulf %200, %204 : vector<1x256xf32>
    %206 = arith.addf %186, %205 : vector<1x256xf32>
    %c46 = arith.constant 46 : index
    %207 = memref.load %arg1[%c46] : memref<98xf32, #tpu.memory_space<smem>>
    %c47 = arith.constant 47 : index
    %208 = memref.load %arg1[%c47] : memref<98xf32, #tpu.memory_space<smem>>
    %c0_87 = arith.constant 0 : index
    %c50 = arith.constant 50 : index
    %209 = vector.load %arg5[%c0_87, %c50] : memref<2x358xf32, #tpu.memory_space<vmem>>, vector<1x256xf32>
    %c1_88 = arith.constant 1 : index
    %c50_89 = arith.constant 50 : index
    %210 = vector.load %arg5[%c1_88, %c50_89] : memref<2x358xf32, #tpu.memory_space<vmem>>, vector<1x256xf32>
    %211 = vector.broadcast %207 : f32 to vector<1x256xf32>
    %212 = arith.mulf %209, %211 : vector<1x256xf32>
    %213 = arith.addf %193, %212 : vector<1x256xf32>
    %214 = vector.broadcast %208 : f32 to vector<1x256xf32>
    %215 = arith.mulf %210, %214 : vector<1x256xf32>
    %216 = arith.addf %196, %215 : vector<1x256xf32>
    %c60 = arith.constant 60 : index
    %217 = memref.load %arg1[%c60] : memref<98xf32, #tpu.memory_space<smem>>
    %c61 = arith.constant 61 : index
    %218 = memref.load %arg1[%c61] : memref<98xf32, #tpu.memory_space<smem>>
    %c0_90 = arith.constant 0 : index
    %c66 = arith.constant 66 : index
    %219 = vector.load %arg5[%c0_90, %c66] : memref<2x358xf32, #tpu.memory_space<vmem>>, vector<1x256xf32>
    %c1_91 = arith.constant 1 : index
    %c66_92 = arith.constant 66 : index
    %220 = vector.load %arg5[%c1_91, %c66_92] : memref<2x358xf32, #tpu.memory_space<vmem>>, vector<1x256xf32>
    %221 = vector.broadcast %217 : f32 to vector<1x256xf32>
    %222 = arith.mulf %219, %221 : vector<1x256xf32>
    %223 = arith.addf %203, %222 : vector<1x256xf32>
    %224 = vector.broadcast %218 : f32 to vector<1x256xf32>
    %225 = arith.mulf %220, %224 : vector<1x256xf32>
    %226 = arith.addf %206, %225 : vector<1x256xf32>
    %c74 = arith.constant 74 : index
    %227 = memref.load %arg1[%c74] : memref<98xf32, #tpu.memory_space<smem>>
    %c75 = arith.constant 75 : index
    %228 = memref.load %arg1[%c75] : memref<98xf32, #tpu.memory_space<smem>>
    %c0_93 = arith.constant 0 : index
    %c82 = arith.constant 82 : index
    %229 = vector.load %arg5[%c0_93, %c82] : memref<2x358xf32, #tpu.memory_space<vmem>>, vector<1x256xf32>
    %c1_94 = arith.constant 1 : index
    %c82_95 = arith.constant 82 : index
    %230 = vector.load %arg5[%c1_94, %c82_95] : memref<2x358xf32, #tpu.memory_space<vmem>>, vector<1x256xf32>
    %231 = vector.broadcast %227 : f32 to vector<1x256xf32>
    %232 = arith.mulf %229, %231 : vector<1x256xf32>
    %233 = arith.addf %213, %232 : vector<1x256xf32>
    %234 = vector.broadcast %228 : f32 to vector<1x256xf32>
    %235 = arith.mulf %230, %234 : vector<1x256xf32>
    %236 = arith.addf %216, %235 : vector<1x256xf32>
    %c88 = arith.constant 88 : index
    %237 = memref.load %arg1[%c88] : memref<98xf32, #tpu.memory_space<smem>>
    %c89 = arith.constant 89 : index
    %238 = memref.load %arg1[%c89] : memref<98xf32, #tpu.memory_space<smem>>
    %c0_96 = arith.constant 0 : index
    %c98 = arith.constant 98 : index
    %239 = vector.load %arg5[%c0_96, %c98] : memref<2x358xf32, #tpu.memory_space<vmem>>, vector<1x256xf32>
    %c1_97 = arith.constant 1 : index
    %c98_98 = arith.constant 98 : index
    %240 = vector.load %arg5[%c1_97, %c98_98] : memref<2x358xf32, #tpu.memory_space<vmem>>, vector<1x256xf32>
    %241 = vector.broadcast %237 : f32 to vector<1x256xf32>
    %242 = arith.mulf %239, %241 : vector<1x256xf32>
    %243 = arith.addf %223, %242 : vector<1x256xf32>
    %244 = vector.broadcast %238 : f32 to vector<1x256xf32>
    %245 = arith.mulf %240, %244 : vector<1x256xf32>
    %246 = arith.addf %226, %245 : vector<1x256xf32>
    %c2_99 = arith.constant 2 : index
    %c0_100 = arith.constant 0 : index
    %247 = vector.load %arg2[%c2_99, %c0_100] : memref<7x256xf32, #tpu.memory_space<vmem>>, vector<1x256xf32>
    %248 = arith.addf %243, %233 : vector<1x256xf32>
    %249 = arith.addf %246, %236 : vector<1x256xf32>
    %250 = arith.addf %248, %249 : vector<1x256xf32>
    %251 = arith.mulf %247, %250 : vector<1x256xf32>
    %252 = arith.addf %172, %251 : vector<1x256xf32>
    %cst_101 = arith.constant 0.000000e+00 : f32
    %253 = vector.broadcast %cst_101 : f32 to vector<1x256xf32>
    %cst_102 = arith.constant 0.000000e+00 : f32
    %254 = vector.broadcast %cst_102 : f32 to vector<1x256xf32>
    %cst_103 = arith.constant 0.000000e+00 : f32
    %255 = vector.broadcast %cst_103 : f32 to vector<1x256xf32>
    %cst_104 = arith.constant 0.000000e+00 : f32
    %256 = vector.broadcast %cst_104 : f32 to vector<1x256xf32>
    %c6 = arith.constant 6 : index
    %257 = memref.load %arg1[%c6] : memref<98xf32, #tpu.memory_space<smem>>
    %c7 = arith.constant 7 : index
    %258 = memref.load %arg1[%c7] : memref<98xf32, #tpu.memory_space<smem>>
    %c0_105 = arith.constant 0 : index
    %c3_106 = arith.constant 3 : index
    %259 = vector.load %arg5[%c0_105, %c3_106] : memref<2x358xf32, #tpu.memory_space<vmem>>, vector<1x256xf32>
    %c1_107 = arith.constant 1 : index
    %c3_108 = arith.constant 3 : index
    %260 = vector.load %arg5[%c1_107, %c3_108] : memref<2x358xf32, #tpu.memory_space<vmem>>, vector<1x256xf32>
    %261 = vector.broadcast %257 : f32 to vector<1x256xf32>
    %262 = arith.mulf %259, %261 : vector<1x256xf32>
    %263 = arith.addf %253, %262 : vector<1x256xf32>
    %264 = vector.broadcast %258 : f32 to vector<1x256xf32>
    %265 = arith.mulf %260, %264 : vector<1x256xf32>
    %266 = arith.addf %255, %265 : vector<1x256xf32>
    %c20 = arith.constant 20 : index
    %267 = memref.load %arg1[%c20] : memref<98xf32, #tpu.memory_space<smem>>
    %c21 = arith.constant 21 : index
    %268 = memref.load %arg1[%c21] : memref<98xf32, #tpu.memory_space<smem>>
    %c0_109 = arith.constant 0 : index
    %c19_110 = arith.constant 19 : index
    %269 = vector.load %arg5[%c0_109, %c19_110] : memref<2x358xf32, #tpu.memory_space<vmem>>, vector<1x256xf32>
    %c1_111 = arith.constant 1 : index
    %c19_112 = arith.constant 19 : index
    %270 = vector.load %arg5[%c1_111, %c19_112] : memref<2x358xf32, #tpu.memory_space<vmem>>, vector<1x256xf32>
    %271 = vector.broadcast %267 : f32 to vector<1x256xf32>
    %272 = arith.mulf %269, %271 : vector<1x256xf32>
    %273 = arith.addf %254, %272 : vector<1x256xf32>
    %274 = vector.broadcast %268 : f32 to vector<1x256xf32>
    %275 = arith.mulf %270, %274 : vector<1x256xf32>
    %276 = arith.addf %256, %275 : vector<1x256xf32>
    %c34_113 = arith.constant 34 : index
    %277 = memref.load %arg1[%c34_113] : memref<98xf32, #tpu.memory_space<smem>>
    %c35 = arith.constant 35 : index
    %278 = memref.load %arg1[%c35] : memref<98xf32, #tpu.memory_space<smem>>
    %c0_114 = arith.constant 0 : index
    %c35_115 = arith.constant 35 : index
    %279 = vector.load %arg5[%c0_114, %c35_115] : memref<2x358xf32, #tpu.memory_space<vmem>>, vector<1x256xf32>
    %c1_116 = arith.constant 1 : index
    %c35_117 = arith.constant 35 : index
    %280 = vector.load %arg5[%c1_116, %c35_117] : memref<2x358xf32, #tpu.memory_space<vmem>>, vector<1x256xf32>
    %281 = vector.broadcast %277 : f32 to vector<1x256xf32>
    %282 = arith.mulf %279, %281 : vector<1x256xf32>
    %283 = arith.addf %263, %282 : vector<1x256xf32>
    %284 = vector.broadcast %278 : f32 to vector<1x256xf32>
    %285 = arith.mulf %280, %284 : vector<1x256xf32>
    %286 = arith.addf %266, %285 : vector<1x256xf32>
    %c48_118 = arith.constant 48 : index
    %287 = memref.load %arg1[%c48_118] : memref<98xf32, #tpu.memory_space<smem>>
    %c49_119 = arith.constant 49 : index
    %288 = memref.load %arg1[%c49_119] : memref<98xf32, #tpu.memory_space<smem>>
    %c0_120 = arith.constant 0 : index
    %c51_121 = arith.constant 51 : index
    %289 = vector.load %arg5[%c0_120, %c51_121] : memref<2x358xf32, #tpu.memory_space<vmem>>, vector<1x256xf32>
    %c1_122 = arith.constant 1 : index
    %c51_123 = arith.constant 51 : index
    %290 = vector.load %arg5[%c1_122, %c51_123] : memref<2x358xf32, #tpu.memory_space<vmem>>, vector<1x256xf32>
    %291 = vector.broadcast %287 : f32 to vector<1x256xf32>
    %292 = arith.mulf %289, %291 : vector<1x256xf32>
    %293 = arith.addf %273, %292 : vector<1x256xf32>
    %294 = vector.broadcast %288 : f32 to vector<1x256xf32>
    %295 = arith.mulf %290, %294 : vector<1x256xf32>
    %296 = arith.addf %276, %295 : vector<1x256xf32>
    %c62 = arith.constant 62 : index
    %297 = memref.load %arg1[%c62] : memref<98xf32, #tpu.memory_space<smem>>
    %c63 = arith.constant 63 : index
    %298 = memref.load %arg1[%c63] : memref<98xf32, #tpu.memory_space<smem>>
    %c0_124 = arith.constant 0 : index
    %c67 = arith.constant 67 : index
    %299 = vector.load %arg5[%c0_124, %c67] : memref<2x358xf32, #tpu.memory_space<vmem>>, vector<1x256xf32>
    %c1_125 = arith.constant 1 : index
    %c67_126 = arith.constant 67 : index
    %300 = vector.load %arg5[%c1_125, %c67_126] : memref<2x358xf32, #tpu.memory_space<vmem>>, vector<1x256xf32>
    %301 = vector.broadcast %297 : f32 to vector<1x256xf32>
    %302 = arith.mulf %299, %301 : vector<1x256xf32>
    %303 = arith.addf %283, %302 : vector<1x256xf32>
    %304 = vector.broadcast %298 : f32 to vector<1x256xf32>
    %305 = arith.mulf %300, %304 : vector<1x256xf32>
    %306 = arith.addf %286, %305 : vector<1x256xf32>
    %c76 = arith.constant 76 : index
    %307 = memref.load %arg1[%c76] : memref<98xf32, #tpu.memory_space<smem>>
    %c77 = arith.constant 77 : index
    %308 = memref.load %arg1[%c77] : memref<98xf32, #tpu.memory_space<smem>>
    %c0_127 = arith.constant 0 : index
    %c83 = arith.constant 83 : index
    %309 = vector.load %arg5[%c0_127, %c83] : memref<2x358xf32, #tpu.memory_space<vmem>>, vector<1x256xf32>
    %c1_128 = arith.constant 1 : index
    %c83_129 = arith.constant 83 : index
    %310 = vector.load %arg5[%c1_128, %c83_129] : memref<2x358xf32, #tpu.memory_space<vmem>>, vector<1x256xf32>
    %311 = vector.broadcast %307 : f32 to vector<1x256xf32>
    %312 = arith.mulf %309, %311 : vector<1x256xf32>
    %313 = arith.addf %293, %312 : vector<1x256xf32>
    %314 = vector.broadcast %308 : f32 to vector<1x256xf32>
    %315 = arith.mulf %310, %314 : vector<1x256xf32>
    %316 = arith.addf %296, %315 : vector<1x256xf32>
    %c90 = arith.constant 90 : index
    %317 = memref.load %arg1[%c90] : memref<98xf32, #tpu.memory_space<smem>>
    %c91 = arith.constant 91 : index
    %318 = memref.load %arg1[%c91] : memref<98xf32, #tpu.memory_space<smem>>
    %c0_130 = arith.constant 0 : index
    %c99 = arith.constant 99 : index
    %319 = vector.load %arg5[%c0_130, %c99] : memref<2x358xf32, #tpu.memory_space<vmem>>, vector<1x256xf32>
    %c1_131 = arith.constant 1 : index
    %c99_132 = arith.constant 99 : index
    %320 = vector.load %arg5[%c1_131, %c99_132] : memref<2x358xf32, #tpu.memory_space<vmem>>, vector<1x256xf32>
    %321 = vector.broadcast %317 : f32 to vector<1x256xf32>
    %322 = arith.mulf %319, %321 : vector<1x256xf32>
    %323 = arith.addf %303, %322 : vector<1x256xf32>
    %324 = vector.broadcast %318 : f32 to vector<1x256xf32>
    %325 = arith.mulf %320, %324 : vector<1x256xf32>
    %326 = arith.addf %306, %325 : vector<1x256xf32>
    %c3_133 = arith.constant 3 : index
    %c0_134 = arith.constant 0 : index
    %327 = vector.load %arg2[%c3_133, %c0_134] : memref<7x256xf32, #tpu.memory_space<vmem>>, vector<1x256xf32>
    %328 = arith.addf %323, %313 : vector<1x256xf32>
    %329 = arith.addf %326, %316 : vector<1x256xf32>
    %330 = arith.addf %328, %329 : vector<1x256xf32>
    %331 = arith.mulf %327, %330 : vector<1x256xf32>
    %332 = arith.addf %252, %331 : vector<1x256xf32>
    %cst_135 = arith.constant 0.000000e+00 : f32
    %333 = vector.broadcast %cst_135 : f32 to vector<1x256xf32>
    %cst_136 = arith.constant 0.000000e+00 : f32
    %334 = vector.broadcast %cst_136 : f32 to vector<1x256xf32>
    %cst_137 = arith.constant 0.000000e+00 : f32
    %335 = vector.broadcast %cst_137 : f32 to vector<1x256xf32>
    %cst_138 = arith.constant 0.000000e+00 : f32
    %336 = vector.broadcast %cst_138 : f32 to vector<1x256xf32>
    %c8 = arith.constant 8 : index
    %337 = memref.load %arg1[%c8] : memref<98xf32, #tpu.memory_space<smem>>
    %c9 = arith.constant 9 : index
    %338 = memref.load %arg1[%c9] : memref<98xf32, #tpu.memory_space<smem>>
    %c0_139 = arith.constant 0 : index
    %c4_140 = arith.constant 4 : index
    %339 = vector.load %arg5[%c0_139, %c4_140] : memref<2x358xf32, #tpu.memory_space<vmem>>, vector<1x256xf32>
    %c1_141 = arith.constant 1 : index
    %c4_142 = arith.constant 4 : index
    %340 = vector.load %arg5[%c1_141, %c4_142] : memref<2x358xf32, #tpu.memory_space<vmem>>, vector<1x256xf32>
    %341 = vector.broadcast %337 : f32 to vector<1x256xf32>
    %342 = arith.mulf %339, %341 : vector<1x256xf32>
    %343 = arith.addf %333, %342 : vector<1x256xf32>
    %344 = vector.broadcast %338 : f32 to vector<1x256xf32>
    %345 = arith.mulf %340, %344 : vector<1x256xf32>
    %346 = arith.addf %335, %345 : vector<1x256xf32>
    %c22 = arith.constant 22 : index
    %347 = memref.load %arg1[%c22] : memref<98xf32, #tpu.memory_space<smem>>
    %c23 = arith.constant 23 : index
    %348 = memref.load %arg1[%c23] : memref<98xf32, #tpu.memory_space<smem>>
    %c0_143 = arith.constant 0 : index
    %c20_144 = arith.constant 20 : index
    %349 = vector.load %arg5[%c0_143, %c20_144] : memref<2x358xf32, #tpu.memory_space<vmem>>, vector<1x256xf32>
    %c1_145 = arith.constant 1 : index
    %c20_146 = arith.constant 20 : index
    %350 = vector.load %arg5[%c1_145, %c20_146] : memref<2x358xf32, #tpu.memory_space<vmem>>, vector<1x256xf32>
    %351 = vector.broadcast %347 : f32 to vector<1x256xf32>
    %352 = arith.mulf %349, %351 : vector<1x256xf32>
    %353 = arith.addf %334, %352 : vector<1x256xf32>
    %354 = vector.broadcast %348 : f32 to vector<1x256xf32>
    %355 = arith.mulf %350, %354 : vector<1x256xf32>
    %356 = arith.addf %336, %355 : vector<1x256xf32>
    %c36 = arith.constant 36 : index
    %357 = memref.load %arg1[%c36] : memref<98xf32, #tpu.memory_space<smem>>
    %c37 = arith.constant 37 : index
    %358 = memref.load %arg1[%c37] : memref<98xf32, #tpu.memory_space<smem>>
    %c0_147 = arith.constant 0 : index
    %c36_148 = arith.constant 36 : index
    %359 = vector.load %arg5[%c0_147, %c36_148] : memref<2x358xf32, #tpu.memory_space<vmem>>, vector<1x256xf32>
    %c1_149 = arith.constant 1 : index
    %c36_150 = arith.constant 36 : index
    %360 = vector.load %arg5[%c1_149, %c36_150] : memref<2x358xf32, #tpu.memory_space<vmem>>, vector<1x256xf32>
    %361 = vector.broadcast %357 : f32 to vector<1x256xf32>
    %362 = arith.mulf %359, %361 : vector<1x256xf32>
    %363 = arith.addf %343, %362 : vector<1x256xf32>
    %364 = vector.broadcast %358 : f32 to vector<1x256xf32>
    %365 = arith.mulf %360, %364 : vector<1x256xf32>
    %366 = arith.addf %346, %365 : vector<1x256xf32>
    %c50_151 = arith.constant 50 : index
    %367 = memref.load %arg1[%c50_151] : memref<98xf32, #tpu.memory_space<smem>>
    %c51_152 = arith.constant 51 : index
    %368 = memref.load %arg1[%c51_152] : memref<98xf32, #tpu.memory_space<smem>>
    %c0_153 = arith.constant 0 : index
    %c52 = arith.constant 52 : index
    %369 = vector.load %arg5[%c0_153, %c52] : memref<2x358xf32, #tpu.memory_space<vmem>>, vector<1x256xf32>
    %c1_154 = arith.constant 1 : index
    %c52_155 = arith.constant 52 : index
    %370 = vector.load %arg5[%c1_154, %c52_155] : memref<2x358xf32, #tpu.memory_space<vmem>>, vector<1x256xf32>
    %371 = vector.broadcast %367 : f32 to vector<1x256xf32>
    %372 = arith.mulf %369, %371 : vector<1x256xf32>
    %373 = arith.addf %353, %372 : vector<1x256xf32>
    %374 = vector.broadcast %368 : f32 to vector<1x256xf32>
    %375 = arith.mulf %370, %374 : vector<1x256xf32>
    %376 = arith.addf %356, %375 : vector<1x256xf32>
    %c64_156 = arith.constant 64 : index
    %377 = memref.load %arg1[%c64_156] : memref<98xf32, #tpu.memory_space<smem>>
    %c65_157 = arith.constant 65 : index
    %378 = memref.load %arg1[%c65_157] : memref<98xf32, #tpu.memory_space<smem>>
    %c0_158 = arith.constant 0 : index
    %c68 = arith.constant 68 : index
    %379 = vector.load %arg5[%c0_158, %c68] : memref<2x358xf32, #tpu.memory_space<vmem>>, vector<1x256xf32>
    %c1_159 = arith.constant 1 : index
    %c68_160 = arith.constant 68 : index
    %380 = vector.load %arg5[%c1_159, %c68_160] : memref<2x358xf32, #tpu.memory_space<vmem>>, vector<1x256xf32>
    %381 = vector.broadcast %377 : f32 to vector<1x256xf32>
    %382 = arith.mulf %379, %381 : vector<1x256xf32>
    %383 = arith.addf %363, %382 : vector<1x256xf32>
    %384 = vector.broadcast %378 : f32 to vector<1x256xf32>
    %385 = arith.mulf %380, %384 : vector<1x256xf32>
    %386 = arith.addf %366, %385 : vector<1x256xf32>
    %c78 = arith.constant 78 : index
    %387 = memref.load %arg1[%c78] : memref<98xf32, #tpu.memory_space<smem>>
    %c79 = arith.constant 79 : index
    %388 = memref.load %arg1[%c79] : memref<98xf32, #tpu.memory_space<smem>>
    %c0_161 = arith.constant 0 : index
    %c84_162 = arith.constant 84 : index
    %389 = vector.load %arg5[%c0_161, %c84_162] : memref<2x358xf32, #tpu.memory_space<vmem>>, vector<1x256xf32>
    %c1_163 = arith.constant 1 : index
    %c84_164 = arith.constant 84 : index
    %390 = vector.load %arg5[%c1_163, %c84_164] : memref<2x358xf32, #tpu.memory_space<vmem>>, vector<1x256xf32>
    %391 = vector.broadcast %387 : f32 to vector<1x256xf32>
    %392 = arith.mulf %389, %391 : vector<1x256xf32>
    %393 = arith.addf %373, %392 : vector<1x256xf32>
    %394 = vector.broadcast %388 : f32 to vector<1x256xf32>
    %395 = arith.mulf %390, %394 : vector<1x256xf32>
    %396 = arith.addf %376, %395 : vector<1x256xf32>
    %c92 = arith.constant 92 : index
    %397 = memref.load %arg1[%c92] : memref<98xf32, #tpu.memory_space<smem>>
    %c93 = arith.constant 93 : index
    %398 = memref.load %arg1[%c93] : memref<98xf32, #tpu.memory_space<smem>>
    %c0_165 = arith.constant 0 : index
    %c100 = arith.constant 100 : index
    %399 = vector.load %arg5[%c0_165, %c100] : memref<2x358xf32, #tpu.memory_space<vmem>>, vector<1x256xf32>
    %c1_166 = arith.constant 1 : index
    %c100_167 = arith.constant 100 : index
    %400 = vector.load %arg5[%c1_166, %c100_167] : memref<2x358xf32, #tpu.memory_space<vmem>>, vector<1x256xf32>
    %401 = vector.broadcast %397 : f32 to vector<1x256xf32>
    %402 = arith.mulf %399, %401 : vector<1x256xf32>
    %403 = arith.addf %383, %402 : vector<1x256xf32>
    %404 = vector.broadcast %398 : f32 to vector<1x256xf32>
    %405 = arith.mulf %400, %404 : vector<1x256xf32>
    %406 = arith.addf %386, %405 : vector<1x256xf32>
    %c4_168 = arith.constant 4 : index
    %c0_169 = arith.constant 0 : index
    %407 = vector.load %arg2[%c4_168, %c0_169] : memref<7x256xf32, #tpu.memory_space<vmem>>, vector<1x256xf32>
    %408 = arith.addf %403, %393 : vector<1x256xf32>
    %409 = arith.addf %406, %396 : vector<1x256xf32>
    %410 = arith.addf %408, %409 : vector<1x256xf32>
    %411 = arith.mulf %407, %410 : vector<1x256xf32>
    %412 = arith.addf %332, %411 : vector<1x256xf32>
    %cst_170 = arith.constant 0.000000e+00 : f32
    %413 = vector.broadcast %cst_170 : f32 to vector<1x256xf32>
    %cst_171 = arith.constant 0.000000e+00 : f32
    %414 = vector.broadcast %cst_171 : f32 to vector<1x256xf32>
    %cst_172 = arith.constant 0.000000e+00 : f32
    %415 = vector.broadcast %cst_172 : f32 to vector<1x256xf32>
    %cst_173 = arith.constant 0.000000e+00 : f32
    %416 = vector.broadcast %cst_173 : f32 to vector<1x256xf32>
    %c10 = arith.constant 10 : index
    %417 = memref.load %arg1[%c10] : memref<98xf32, #tpu.memory_space<smem>>
    %c11 = arith.constant 11 : index
    %418 = memref.load %arg1[%c11] : memref<98xf32, #tpu.memory_space<smem>>
    %c0_174 = arith.constant 0 : index
    %c5_175 = arith.constant 5 : index
    %419 = vector.load %arg5[%c0_174, %c5_175] : memref<2x358xf32, #tpu.memory_space<vmem>>, vector<1x256xf32>
    %c1_176 = arith.constant 1 : index
    %c5_177 = arith.constant 5 : index
    %420 = vector.load %arg5[%c1_176, %c5_177] : memref<2x358xf32, #tpu.memory_space<vmem>>, vector<1x256xf32>
    %421 = vector.broadcast %417 : f32 to vector<1x256xf32>
    %422 = arith.mulf %419, %421 : vector<1x256xf32>
    %423 = arith.addf %413, %422 : vector<1x256xf32>
    %424 = vector.broadcast %418 : f32 to vector<1x256xf32>
    %425 = arith.mulf %420, %424 : vector<1x256xf32>
    %426 = arith.addf %415, %425 : vector<1x256xf32>
    %c24 = arith.constant 24 : index
    %427 = memref.load %arg1[%c24] : memref<98xf32, #tpu.memory_space<smem>>
    %c25 = arith.constant 25 : index
    %428 = memref.load %arg1[%c25] : memref<98xf32, #tpu.memory_space<smem>>
    %c0_178 = arith.constant 0 : index
    %c21_179 = arith.constant 21 : index
    %429 = vector.load %arg5[%c0_178, %c21_179] : memref<2x358xf32, #tpu.memory_space<vmem>>, vector<1x256xf32>
    %c1_180 = arith.constant 1 : index
    %c21_181 = arith.constant 21 : index
    %430 = vector.load %arg5[%c1_180, %c21_181] : memref<2x358xf32, #tpu.memory_space<vmem>>, vector<1x256xf32>
    %431 = vector.broadcast %427 : f32 to vector<1x256xf32>
    %432 = arith.mulf %429, %431 : vector<1x256xf32>
    %433 = arith.addf %414, %432 : vector<1x256xf32>
    %434 = vector.broadcast %428 : f32 to vector<1x256xf32>
    %435 = arith.mulf %430, %434 : vector<1x256xf32>
    %436 = arith.addf %416, %435 : vector<1x256xf32>
    %c38 = arith.constant 38 : index
    %437 = memref.load %arg1[%c38] : memref<98xf32, #tpu.memory_space<smem>>
    %c39 = arith.constant 39 : index
    %438 = memref.load %arg1[%c39] : memref<98xf32, #tpu.memory_space<smem>>
    %c0_182 = arith.constant 0 : index
    %c37_183 = arith.constant 37 : index
    %439 = vector.load %arg5[%c0_182, %c37_183] : memref<2x358xf32, #tpu.memory_space<vmem>>, vector<1x256xf32>
    %c1_184 = arith.constant 1 : index
    %c37_185 = arith.constant 37 : index
    %440 = vector.load %arg5[%c1_184, %c37_185] : memref<2x358xf32, #tpu.memory_space<vmem>>, vector<1x256xf32>
    %441 = vector.broadcast %437 : f32 to vector<1x256xf32>
    %442 = arith.mulf %439, %441 : vector<1x256xf32>
    %443 = arith.addf %423, %442 : vector<1x256xf32>
    %444 = vector.broadcast %438 : f32 to vector<1x256xf32>
    %445 = arith.mulf %440, %444 : vector<1x256xf32>
    %446 = arith.addf %426, %445 : vector<1x256xf32>
    %c52_186 = arith.constant 52 : index
    %447 = memref.load %arg1[%c52_186] : memref<98xf32, #tpu.memory_space<smem>>
    %c53 = arith.constant 53 : index
    %448 = memref.load %arg1[%c53] : memref<98xf32, #tpu.memory_space<smem>>
    %c0_187 = arith.constant 0 : index
    %c53_188 = arith.constant 53 : index
    %449 = vector.load %arg5[%c0_187, %c53_188] : memref<2x358xf32, #tpu.memory_space<vmem>>, vector<1x256xf32>
    %c1_189 = arith.constant 1 : index
    %c53_190 = arith.constant 53 : index
    %450 = vector.load %arg5[%c1_189, %c53_190] : memref<2x358xf32, #tpu.memory_space<vmem>>, vector<1x256xf32>
    %451 = vector.broadcast %447 : f32 to vector<1x256xf32>
    %452 = arith.mulf %449, %451 : vector<1x256xf32>
    %453 = arith.addf %433, %452 : vector<1x256xf32>
    %454 = vector.broadcast %448 : f32 to vector<1x256xf32>
    %455 = arith.mulf %450, %454 : vector<1x256xf32>
    %456 = arith.addf %436, %455 : vector<1x256xf32>
    %c66_191 = arith.constant 66 : index
    %457 = memref.load %arg1[%c66_191] : memref<98xf32, #tpu.memory_space<smem>>
    %c67_192 = arith.constant 67 : index
    %458 = memref.load %arg1[%c67_192] : memref<98xf32, #tpu.memory_space<smem>>
    %c0_193 = arith.constant 0 : index
    %c69 = arith.constant 69 : index
    %459 = vector.load %arg5[%c0_193, %c69] : memref<2x358xf32, #tpu.memory_space<vmem>>, vector<1x256xf32>
    %c1_194 = arith.constant 1 : index
    %c69_195 = arith.constant 69 : index
    %460 = vector.load %arg5[%c1_194, %c69_195] : memref<2x358xf32, #tpu.memory_space<vmem>>, vector<1x256xf32>
    %461 = vector.broadcast %457 : f32 to vector<1x256xf32>
    %462 = arith.mulf %459, %461 : vector<1x256xf32>
    %463 = arith.addf %443, %462 : vector<1x256xf32>
    %464 = vector.broadcast %458 : f32 to vector<1x256xf32>
    %465 = arith.mulf %460, %464 : vector<1x256xf32>
    %466 = arith.addf %446, %465 : vector<1x256xf32>
    %c80_196 = arith.constant 80 : index
    %467 = memref.load %arg1[%c80_196] : memref<98xf32, #tpu.memory_space<smem>>
    %c81_197 = arith.constant 81 : index
    %468 = memref.load %arg1[%c81_197] : memref<98xf32, #tpu.memory_space<smem>>
    %c0_198 = arith.constant 0 : index
    %c85_199 = arith.constant 85 : index
    %469 = vector.load %arg5[%c0_198, %c85_199] : memref<2x358xf32, #tpu.memory_space<vmem>>, vector<1x256xf32>
    %c1_200 = arith.constant 1 : index
    %c85_201 = arith.constant 85 : index
    %470 = vector.load %arg5[%c1_200, %c85_201] : memref<2x358xf32, #tpu.memory_space<vmem>>, vector<1x256xf32>
    %471 = vector.broadcast %467 : f32 to vector<1x256xf32>
    %472 = arith.mulf %469, %471 : vector<1x256xf32>
    %473 = arith.addf %453, %472 : vector<1x256xf32>
    %474 = vector.broadcast %468 : f32 to vector<1x256xf32>
    %475 = arith.mulf %470, %474 : vector<1x256xf32>
    %476 = arith.addf %456, %475 : vector<1x256xf32>
    %c94 = arith.constant 94 : index
    %477 = memref.load %arg1[%c94] : memref<98xf32, #tpu.memory_space<smem>>
    %c95 = arith.constant 95 : index
    %478 = memref.load %arg1[%c95] : memref<98xf32, #tpu.memory_space<smem>>
    %c0_202 = arith.constant 0 : index
    %c101 = arith.constant 101 : index
    %479 = vector.load %arg5[%c0_202, %c101] : memref<2x358xf32, #tpu.memory_space<vmem>>, vector<1x256xf32>
    %c1_203 = arith.constant 1 : index
    %c101_204 = arith.constant 101 : index
    %480 = vector.load %arg5[%c1_203, %c101_204] : memref<2x358xf32, #tpu.memory_space<vmem>>, vector<1x256xf32>
    %481 = vector.broadcast %477 : f32 to vector<1x256xf32>
    %482 = arith.mulf %479, %481 : vector<1x256xf32>
    %483 = arith.addf %463, %482 : vector<1x256xf32>
    %484 = vector.broadcast %478 : f32 to vector<1x256xf32>
    %485 = arith.mulf %480, %484 : vector<1x256xf32>
    %486 = arith.addf %466, %485 : vector<1x256xf32>
    %c5_205 = arith.constant 5 : index
    %c0_206 = arith.constant 0 : index
    %487 = vector.load %arg2[%c5_205, %c0_206] : memref<7x256xf32, #tpu.memory_space<vmem>>, vector<1x256xf32>
    %488 = arith.addf %483, %473 : vector<1x256xf32>
    %489 = arith.addf %486, %476 : vector<1x256xf32>
    %490 = arith.addf %488, %489 : vector<1x256xf32>
    %491 = arith.mulf %487, %490 : vector<1x256xf32>
    %492 = arith.addf %412, %491 : vector<1x256xf32>
    %cst_207 = arith.constant 0.000000e+00 : f32
    %493 = vector.broadcast %cst_207 : f32 to vector<1x256xf32>
    %cst_208 = arith.constant 0.000000e+00 : f32
    %494 = vector.broadcast %cst_208 : f32 to vector<1x256xf32>
    %cst_209 = arith.constant 0.000000e+00 : f32
    %495 = vector.broadcast %cst_209 : f32 to vector<1x256xf32>
    %cst_210 = arith.constant 0.000000e+00 : f32
    %496 = vector.broadcast %cst_210 : f32 to vector<1x256xf32>
    %c12 = arith.constant 12 : index
    %497 = memref.load %arg1[%c12] : memref<98xf32, #tpu.memory_space<smem>>
    %c13 = arith.constant 13 : index
    %498 = memref.load %arg1[%c13] : memref<98xf32, #tpu.memory_space<smem>>
    %c0_211 = arith.constant 0 : index
    %c6_212 = arith.constant 6 : index
    %499 = vector.load %arg5[%c0_211, %c6_212] : memref<2x358xf32, #tpu.memory_space<vmem>>, vector<1x256xf32>
    %c1_213 = arith.constant 1 : index
    %c6_214 = arith.constant 6 : index
    %500 = vector.load %arg5[%c1_213, %c6_214] : memref<2x358xf32, #tpu.memory_space<vmem>>, vector<1x256xf32>
    %501 = vector.broadcast %497 : f32 to vector<1x256xf32>
    %502 = arith.mulf %499, %501 : vector<1x256xf32>
    %503 = arith.addf %493, %502 : vector<1x256xf32>
    %504 = vector.broadcast %498 : f32 to vector<1x256xf32>
    %505 = arith.mulf %500, %504 : vector<1x256xf32>
    %506 = arith.addf %495, %505 : vector<1x256xf32>
    %c26 = arith.constant 26 : index
    %507 = memref.load %arg1[%c26] : memref<98xf32, #tpu.memory_space<smem>>
    %c27 = arith.constant 27 : index
    %508 = memref.load %arg1[%c27] : memref<98xf32, #tpu.memory_space<smem>>
    %c0_215 = arith.constant 0 : index
    %c22_216 = arith.constant 22 : index
    %509 = vector.load %arg5[%c0_215, %c22_216] : memref<2x358xf32, #tpu.memory_space<vmem>>, vector<1x256xf32>
    %c1_217 = arith.constant 1 : index
    %c22_218 = arith.constant 22 : index
    %510 = vector.load %arg5[%c1_217, %c22_218] : memref<2x358xf32, #tpu.memory_space<vmem>>, vector<1x256xf32>
    %511 = vector.broadcast %507 : f32 to vector<1x256xf32>
    %512 = arith.mulf %509, %511 : vector<1x256xf32>
    %513 = arith.addf %494, %512 : vector<1x256xf32>
    %514 = vector.broadcast %508 : f32 to vector<1x256xf32>
    %515 = arith.mulf %510, %514 : vector<1x256xf32>
    %516 = arith.addf %496, %515 : vector<1x256xf32>
    %c40 = arith.constant 40 : index
    %517 = memref.load %arg1[%c40] : memref<98xf32, #tpu.memory_space<smem>>
    %c41 = arith.constant 41 : index
    %518 = memref.load %arg1[%c41] : memref<98xf32, #tpu.memory_space<smem>>
    %c0_219 = arith.constant 0 : index
    %c38_220 = arith.constant 38 : index
    %519 = vector.load %arg5[%c0_219, %c38_220] : memref<2x358xf32, #tpu.memory_space<vmem>>, vector<1x256xf32>
    %c1_221 = arith.constant 1 : index
    %c38_222 = arith.constant 38 : index
    %520 = vector.load %arg5[%c1_221, %c38_222] : memref<2x358xf32, #tpu.memory_space<vmem>>, vector<1x256xf32>
    %521 = vector.broadcast %517 : f32 to vector<1x256xf32>
    %522 = arith.mulf %519, %521 : vector<1x256xf32>
    %523 = arith.addf %503, %522 : vector<1x256xf32>
    %524 = vector.broadcast %518 : f32 to vector<1x256xf32>
    %525 = arith.mulf %520, %524 : vector<1x256xf32>
    %526 = arith.addf %506, %525 : vector<1x256xf32>
    %c54 = arith.constant 54 : index
    %527 = memref.load %arg1[%c54] : memref<98xf32, #tpu.memory_space<smem>>
    %c55 = arith.constant 55 : index
    %528 = memref.load %arg1[%c55] : memref<98xf32, #tpu.memory_space<smem>>
    %c0_223 = arith.constant 0 : index
    %c54_224 = arith.constant 54 : index
    %529 = vector.load %arg5[%c0_223, %c54_224] : memref<2x358xf32, #tpu.memory_space<vmem>>, vector<1x256xf32>
    %c1_225 = arith.constant 1 : index
    %c54_226 = arith.constant 54 : index
    %530 = vector.load %arg5[%c1_225, %c54_226] : memref<2x358xf32, #tpu.memory_space<vmem>>, vector<1x256xf32>
    %531 = vector.broadcast %527 : f32 to vector<1x256xf32>
    %532 = arith.mulf %529, %531 : vector<1x256xf32>
    %533 = arith.addf %513, %532 : vector<1x256xf32>
    %534 = vector.broadcast %528 : f32 to vector<1x256xf32>
    %535 = arith.mulf %530, %534 : vector<1x256xf32>
    %536 = arith.addf %516, %535 : vector<1x256xf32>
    %c68_227 = arith.constant 68 : index
    %537 = memref.load %arg1[%c68_227] : memref<98xf32, #tpu.memory_space<smem>>
    %c69_228 = arith.constant 69 : index
    %538 = memref.load %arg1[%c69_228] : memref<98xf32, #tpu.memory_space<smem>>
    %c0_229 = arith.constant 0 : index
    %c70_230 = arith.constant 70 : index
    %539 = vector.load %arg5[%c0_229, %c70_230] : memref<2x358xf32, #tpu.memory_space<vmem>>, vector<1x256xf32>
    %c1_231 = arith.constant 1 : index
    %c70_232 = arith.constant 70 : index
    %540 = vector.load %arg5[%c1_231, %c70_232] : memref<2x358xf32, #tpu.memory_space<vmem>>, vector<1x256xf32>
    %541 = vector.broadcast %537 : f32 to vector<1x256xf32>
    %542 = arith.mulf %539, %541 : vector<1x256xf32>
    %543 = arith.addf %523, %542 : vector<1x256xf32>
    %544 = vector.broadcast %538 : f32 to vector<1x256xf32>
    %545 = arith.mulf %540, %544 : vector<1x256xf32>
    %546 = arith.addf %526, %545 : vector<1x256xf32>
    %c82_233 = arith.constant 82 : index
    %547 = memref.load %arg1[%c82_233] : memref<98xf32, #tpu.memory_space<smem>>
    %c83_234 = arith.constant 83 : index
    %548 = memref.load %arg1[%c83_234] : memref<98xf32, #tpu.memory_space<smem>>
    %c0_235 = arith.constant 0 : index
    %c86_236 = arith.constant 86 : index
    %549 = vector.load %arg5[%c0_235, %c86_236] : memref<2x358xf32, #tpu.memory_space<vmem>>, vector<1x256xf32>
    %c1_237 = arith.constant 1 : index
    %c86_238 = arith.constant 86 : index
    %550 = vector.load %arg5[%c1_237, %c86_238] : memref<2x358xf32, #tpu.memory_space<vmem>>, vector<1x256xf32>
    %551 = vector.broadcast %547 : f32 to vector<1x256xf32>
    %552 = arith.mulf %549, %551 : vector<1x256xf32>
    %553 = arith.addf %533, %552 : vector<1x256xf32>
    %554 = vector.broadcast %548 : f32 to vector<1x256xf32>
    %555 = arith.mulf %550, %554 : vector<1x256xf32>
    %556 = arith.addf %536, %555 : vector<1x256xf32>
    %c96_239 = arith.constant 96 : index
    %557 = memref.load %arg1[%c96_239] : memref<98xf32, #tpu.memory_space<smem>>
    %c97_240 = arith.constant 97 : index
    %558 = memref.load %arg1[%c97_240] : memref<98xf32, #tpu.memory_space<smem>>
    %c0_241 = arith.constant 0 : index
    %c102 = arith.constant 102 : index
    %559 = vector.load %arg5[%c0_241, %c102] : memref<2x358xf32, #tpu.memory_space<vmem>>, vector<1x256xf32>
    %c1_242 = arith.constant 1 : index
    %c102_243 = arith.constant 102 : index
    %560 = vector.load %arg5[%c1_242, %c102_243] : memref<2x358xf32, #tpu.memory_space<vmem>>, vector<1x256xf32>
    %561 = vector.broadcast %557 : f32 to vector<1x256xf32>
    %562 = arith.mulf %559, %561 : vector<1x256xf32>
    %563 = arith.addf %543, %562 : vector<1x256xf32>
    %564 = vector.broadcast %558 : f32 to vector<1x256xf32>
    %565 = arith.mulf %560, %564 : vector<1x256xf32>
    %566 = arith.addf %546, %565 : vector<1x256xf32>
    %c6_244 = arith.constant 6 : index
    %c0_245 = arith.constant 0 : index
    %567 = vector.load %arg2[%c6_244, %c0_245] : memref<7x256xf32, #tpu.memory_space<vmem>>, vector<1x256xf32>
    %568 = arith.addf %563, %553 : vector<1x256xf32>
    %569 = arith.addf %566, %556 : vector<1x256xf32>
    %570 = arith.addf %568, %569 : vector<1x256xf32>
    %571 = arith.mulf %567, %570 : vector<1x256xf32>
    %572 = arith.addf %492, %571 : vector<1x256xf32>
    %c0_246 = arith.constant 0 : index
    %c0_247 = arith.constant 0 : index
    %c0_248 = arith.constant 0 : index
    %573 = vector.load %arg3[%c0_246, %c0_247, %c0_248] : memref<1x32x256xf32, #tpu.memory_space<vmem>>, vector<1x32x256xf32>
    %574 = vector.shape_cast %573 : vector<1x32x256xf32> to vector<32x256xf32>
    %575 = vector.broadcast %572 : vector<1x256xf32> to vector<32x256xf32>
    %576 = arith.mulf %574, %575 : vector<32x256xf32>
    %c0_249 = arith.constant 0 : index
    %c0_250 = arith.constant 0 : index
    %c0_251 = arith.constant 0 : index
    %577 = vector.load %arg4[%c0_249, %c0_250, %c0_251] : memref<1x32x256xf32, #tpu.memory_space<vmem>>, vector<1x32x256xf32>
    %578 = vector.shape_cast %577 : vector<1x32x256xf32> to vector<32x256xf32>
    %579 = vector.shape_cast %576 : vector<32x256xf32> to vector<1x32x256xf32>
    tpu.vector_store %arg4[%c0_249, %c0_250, %c0_251], %579 {strides = array<i32>} : memref<1x32x256xf32, #tpu.memory_space<vmem>>, vector<1x32x256xf32>,
    return
  }
  func.func @transform_0(%arg0: i32) -> i32 {
    %c0_i32 = arith.constant 0 : i32
    %c0_i32_0 = arith.constant 0 : i32
    return %c0_i32 : i32
  }
  func.func @transform_1(%arg0: i32) -> (i32, i32) {
    %c0_i32 = arith.constant 0 : i32
    %c0_i32_0 = arith.constant 0 : i32
    %c0_i32_1 = arith.constant 0 : i32
    return %c0_i32, %c0_i32_0 : i32, i32
  }
  func.func @transform_2(%arg0: i32) -> (i32, i32, i32) {
    %c0_i32 = arith.constant 0 : i32
    %c0_i32_0 = arith.constant 0 : i32
    %c0_i32_1 = arith.constant 0 : i32
    return %arg0, %c0_i32, %c0_i32_0 : i32, i32, i32
  }
  func.func @transform_3(%arg0: i32) -> (i32, i32, i32) {
    %c0_i32 = arith.constant 0 : i32
    %c0_i32_0 = arith.constant 0 : i32
    %c0_i32_1 = arith.constant 0 : i32
    return %arg0, %c0_i32, %c0_i32_0 : i32, i32, i32
  }
}

</mosaic_0001>

<bundles_post_ra>
// kernel: spatial_attention_forward.1
= control target key start
LH: loop header
LB: loop body
LE: loop exit
PB: predicated region body
PF: predicated region fallthrough
CT: control target
= control target key end

     0   :  { %8 = vsyncpa [#allocation4], 0  ;;  %s1598_s12 = smov 0   ;;  %s2173_s0 = inlined_call_operand.vmem [shape: f32[98], index: 0, kind: input, shape index: {}]   ;;  %s2174_s1 = inlined_call_operand.vmem [shape: f32[7,256], index: 1, kind: input, shape index: {}]   ;;  %s2175_s2 = inlined_call_operand.vmem [shape: f32[2,32,256], index: 2, kind: input, shape index: {}]   ;;  %s2176_s3 = inlined_call_operand.vmem [shape: f32[2,32,256], index: 3, kind: output, shape index: {}]  }
   0x1 LB: > { %s1604_s13 = sadd.s32 4294967295, %s1562_s12   ;;  %p1387_p0 = scmp.ge.s32.totalorder %s1562_s12, 1  ;;  %s1562_s12 = sphi %s1598_s12, %s14_s12  }
   0x2   : > { %p113_p1 = scmp.lt.s32.totalorder %s1562_s12, 3  ;;  %s126_s16 = sshll.u32 %s2173_s0, 4  ;;  %s127_s16 = int_to_ptr.vmem [resolvable:$true] %s126_s16 }
   0x3   : > { %p1511_p3 = scmp.eq.s32.totalorder %s1604_s13, 0  ;;  %s1537_s18 = scalar_lea.vmem %s127_s16, 16 }
   0x4   : > { %p1611_p2 = pnand %p1387_p0, %p113_p1  ;;  %p1538_p6 = scmp.ne.s32.totalorder %s127_s16, %s1537_s18 }
   0x5   : > { %p1545_p10 = scmp.lt.s32.totalorder %s127_s16, %s127_s16  ;;  %p1546_p11 = scmp.lt.s32.totalorder %s1537_s18, %s1537_s18 }
   0x6   : > { %p1507_p4 = pneg %p1611_p2 }
   0x7   : > { %p1547_p12 = por %p1546_p11, %p1545_p10 }
   0x8   : > { %p1508_p5 = pnand %p1511_p3, %p1507_p4 }
   0xa   : > { %p1539_p7 = pneg %p1508_p5 }
   0xc   : > { %p1540_p8 = pnand %p1539_p7, %p1538_p6 }
   0xe   : > { %p1541_p9 = pneg %p1540_p8 }
  0x10   : > { %p1548_p13 = pnand %p1547_p12, %p1541_p9 }
  0x12   : > { %1551 = shalt.err (!%p1548_p13)
}
  0x13   : > { %s1564_s19 = smov [#allocation3]   ;;  %150 = sbr.rel (%p1611_p2) target bundleno = 607 (0x25f), region = 32 }
  0x14   : > { %1510 = dma.vmem_to_smem (!%p1508_p5), %s127_s16, 16, %s1564_s19, [#allocation4]  }
  0x1a   : > { %1557 = dma.done.wait (%p1511_p3), [#allocation4], 16  }
  0x1b   : > { %1559 = vsyncadd (%p1511_p3), [#allocation4], 4294967280 }
  0x1c   : > { %156 = sfence }
  0x1d   : > { %p175_p0 = scmp.lt.s32.totalorder %s1604_s13, 1  ;;  %vm185_vm0 = vcmask 1041408   ;;  %vm186_vm1 = vcmask 1043458   ;;  %vm188_vm3 = vcmask 832516   ;;  %v1565_v0 = vmov 0.0   ;;  %s1567_s24 = smov 51  }
  0x1e   : > { %vm187_vm2 = vmor %vm186_vm1, %vm185_vm0  ;;  %v243_v24 = vlaneseq  ;;  %v1566_v28 = vmov 1966171168   ;;  %vm257_vm7 = vcmask 416768   ;;  %s1419_s25 = sld [smem:[#allocation3 + $0x48]]  ;;  %s1415_s26 = sld [smem:[#allocation3 + $0x2c]]  ;;  %vm317_vm9 = vcmask 785408  }
  0x1f   : > { %s2181_s13 = smov (!%p175_p0, %s1604_s13), 1  ;;  %vm189_vm4 = vmor %vm188_vm3, %vm187_vm2  ;;  %v241_v29 = vunpack.c.l.s4 %v1566_v28  ;;  %s1430_s27 = sld [smem:[#allocation3 + $0x2e]]  ;;  %vm358_vm10 = vcmask 523264   ;;  %vm399_vm11 = vcmask 261120   ;;  %vm417_vm12 = vcmask 916480  }
  0x20   : > { %190 = vst.msk [vmem:[#allocation2] sm:$0x3f] %vm189_vm4, %v1565_v0  ;;  %s1501_s20 = sshll.u32 %s2181_s13, 6  ;;  %v1646_v35 = vshrl.u32 %v243_v24, 7  ;;  %vm1649_vm5 = vcmp.ge.s32.totalorder %v243_v24, 51  ;;  %vm262_vm6 = vcmp.lt.s32.totalorder %v243_v24, 307 }
  0x21   : > { %s1636_s23 = scalar_lea.vmem %s2175_s2, %s1501_s20  ;;  %v242_v39 = vunpack.c.0.s8 %v241_v29  ;;  %vm263_vm8 = vmand %vm1649_vm5, %vm262_vm6  ;;  %s1416_s28 = sld [smem:[#allocation3 + $0x2d]]  ;;  %vm568_vm13 = vcmask 1039360   ;;  %vm710_vm14 = vcmask 1031168   ;;  %vm852_vm15 = vcmask 1022976  }
  0x22   : > { %v191_v1 = vld [vmem:[%s1636_s23] sm:$0xff]  ;;  %v192_v2 = vld [vmem:[%s1636_s23 + $0x8] sm:$0xff]  ;;  %v193_v3 = vld [vmem:[%s1636_s23 + $0x10] sm:$0xff]  ;;  %s1434_s29 = sld [smem:[#allocation3 + $0x4a]]  ;;  %s1420_s30 = sld [smem:[#allocation3 + $0x49]]  ;;  %vm994_vm0 = vcmask 1014784  }
  0x23   : > { %v194_v4 = vld [vmem:[%s1636_s23 + $0x18] sm:$0xff]  ;;  %v195_v5 = vld [vmem:[%s1636_s23 + $0x20] sm:$0xff]  ;;  %v196_v6 = vld [vmem:[%s1636_s23 + $0x28] sm:$0xff]  ;;  %v217_v7 = vadd.f32 %v193_v3, %v191_v1  ;;  %v245_v48 = vsub.s32 %v242_v39, %v1646_v35  ;;  %s1445_s4 = sld [smem:[#allocation3 + $0x30]]  ;;  %s1431_s5 = sld [smem:[#allocation3 + $0x2f]]  ;;  %vm1136_vm1 = vcmask 1006592  }
  0x24   : > { %v197_v8 = vld [vmem:[%s1636_s23 + $0x30] sm:$0xff]  ;;  %v198_v9 = vld [vmem:[%s1636_s23 + $0x38] sm:$0xff]  ;;  %v199_v10 = vmax.f32 %v191_v1, %v195_v5  ;;  %v208_v11 = vmax.f32 %v192_v2, %v196_v6  ;;  %v226_v12 = vadd.f32 %v194_v4, %v192_v2  ;;  %v509_v2 = vstv %s1419_s25  ;;  %s1568_s6 = smov 64   ;;  %s1569_s7 = smov 96  }
  0x25   : > { %v200_v13 = vmax.f32 %v193_v3, %v197_v8  ;;  %v209_v14 = vmax.f32 %v194_v4, %v198_v9  ;;  %v218_v15 = vadd.f32 %v217_v7, %v195_v5  ;;  %v469_v3 = vstv %s1415_s26  ;;  %s1449_s8 = sld [smem:[#allocation3 + $0x4c]]  ;;  %s1435_s9 = sld [smem:[#allocation3 + $0x4b]] }
  0x26   : > { %v227_v16 = vadd.f32 %v226_v12, %v196_v6  ;;  %v611_v7 = vstv %s1430_s27  ;;  %s1460_s10 = sld [smem:[#allocation3 + $0x32]]  ;;  %s1446_s11 = sld [smem:[#allocation3 + $0x31]]  ;;  %vm1278_vm2 = vcmask 998400  }
  0x27   : > { %v201_v17 = vmax.f32 %v199_v10, %v200_v13  ;;  %v210_v18 = vmax.f32 %v208_v11, %v209_v14  ;;  %v219_v19 = vadd.f32 %v218_v15, %v197_v8  ;;  %v478_v8 = vstv %s1416_s28  ;;  %s1464_s14 = sld [smem:[#allocation3 + $0x4e]]  ;;  %s1450_s15 = sld [smem:[#allocation3 + $0x4d]] }
  0x28   : > { %v228_v20 = vadd.f32 %v227_v16, %v198_v9  ;;  %v651_v12 = vstv %s1434_s29  ;;  %v518_v13 = vstv %s1420_s30  ;;  %s1475_s16 = sld [smem:[#allocation3 + $0x34]]  ;;  %s1461_s17 = sld [smem:[#allocation3 + $0x33]] }
  0x29   : > { %v202_v21 = vrot.slane %v201_v17, 4  ;;  %v211_v22 = vrot.slane %v210_v18, 4  ;;  %v220_v23 = vrot.slane %v219_v19, 4  ;;  %v753_v16 = vstv %s1445_s4  ;;  %s1479_s18 = sld [smem:[#allocation3 + $0x50]]  ;;  %s1465_s19 = sld [smem:[#allocation3 + $0x4f]] }
  0x2a   : > { %v229_v25 = vrot.slane %v228_v20, 4  ;;  %s1490_s21 = sld [smem:[#allocation3 + $0x36]]  ;;  %s1476_s22 = sld [smem:[#allocation3 + $0x35]] }
  0x2b   : > { %v203_v26 = vmax.f32 %v201_v17, %v202_v21  ;;  %v212_v27 = vmax.f32 %v210_v18, %v211_v22  ;;  %v221_v30 = vadd.f32 %v220_v23, %v219_v19  ;;  %v620_v17 = vstv %s1431_s5  ;;  %s1480_s25 = sld [smem:[#allocation3 + $0x51]]  ;;  %s1413_s26 = sld [smem:[#allocation3 + $0x1e]] }
  0x2c   : > { %v230_v31 = vadd.f32 %v229_v25, %v228_v20  ;;  %v793_v20 = vstv %s1449_s8  ;;  %v660_v21 = vstv %s1435_s9  ;;  %v895_v24 = vstv %s1460_s10  ;;  %s1491_s27 = sld [smem:[#allocation3 + $0x37]]  ;;  %s1401_s28 = sld [smem:[#allocation3 + $0x2a]] }
  0x2d   : > { %v204_v32 = vrot.slane %v203_v26, 2  ;;  %v213_v33 = vrot.slane %v212_v27, 2  ;;  %v222_v34 = vrot.slane %v221_v30, 2  ;;  %v762_v25 = vstv %s1446_s11  ;;  %s1495_s29 = sld [smem:[#allocation3 + $0x53]]  ;;  %s1417_s30 = sld [smem:[#allocation3 + $0x3a]] }
  0x2e   : > { %v231_v36 = vrot.slane %v230_v31, 2  ;;  %v935_v28 = vstv %s1464_s14  ;;  %v802_v29 = vstv %s1450_s15  ;;  %s1414_s4 = sld [smem:[#allocation3 + $0x1f]]  ;;  %s1428_s5 = sld [smem:[#allocation3 + $0x20]] }
  0x2f   : > { %v205_v37 = vmax.f32 %v203_v26, %v204_v32  ;;  %v214_v38 = vmax.f32 %v212_v27, %v213_v33  ;;  %v223_v40 = vadd.f32 %v222_v34, %v221_v30  ;;  %v1037_v32 = vstv %s1475_s16  ;;  %s1402_s8 = sld [smem:[#allocation3 + $0x2b]]  ;;  %s1405_s9 = sld [smem:[#allocation3 + $0x46]] }
  0x30   : > { %v232_v41 = vadd.f32 %v231_v36, %v230_v31  ;;  %v904_v33 = vstv %s1461_s17  ;;  %s1418_s10 = sld [smem:[#allocation3 + $0x3b]]  ;;  %s1421_s11 = sld [smem:[#allocation3 + $0x56]] }
  0x31   : > { %v206_v42 = vrot.slane %v205_v37, 1  ;;  %v215_v43 = vrot.slane %v214_v38, 1  ;;  %v224_v44 = vrot.slane %v223_v40, 1  ;;  %s1429_s14 = sld [smem:[#allocation3 + $0x21]]  ;;  %s1432_s15 = sld [smem:[#allocation3 + $0x3c]] }
  0x32   : > { %v233_v45 = vrot.slane %v232_v41, 1  ;;  %s1406_s16 = sld [smem:[#allocation3 + $0x47]]  ;;  %s1443_s17 = sld [smem:[#allocation3 + $0x22]] }
  0x33   : > { %v207_v46 = vmax.f32 %v205_v37, %v206_v42  ;;  %v216_v47 = vmax.f32 %v214_v38, %v215_v43  ;;  %v225_v49 = vadd.f32 %v224_v44, %v223_v40  ;;  %v1077_v37 = vstv %s1479_s18  ;;  %s1422_s18 = sld [smem:[#allocation3 + $0x57]] }
  0x34   : > { %v234_v50 = vadd.f32 %v233_v45, %v232_v41  ;;  %v944_v38 = vstv %s1465_s19  ;;  %v1179_v41 = vstv %s1490_s21  ;;  %v1046_v42 = vstv %s1476_s22  ;;  %s1436_s19 = sld [smem:[#allocation3 + $0x58]]  ;;  %s1433_s21 = sld [smem:[#allocation3 + $0x3d]] }
  0x35   : > { %v239_v51 = vcombine.low %v207_v46, %v216_v47  ;;  %v235_v52 = vmul.f32 0.03125, %v225_v49  ;;  %v1086_v46 = vstv %s1480_s25  ;;  %v449_v49 = vstv %s1413_s26  ;;  %s1570_s22 = smov 32   ;;  %s1444_s25 = sld [smem:[#allocation3 + $0x23]] }
  0x36   : > { %v236_v53 = vmul.f32 0.03125, %v234_v50  ;;  %v1188_v50 = vstv %s1491_s27  ;;  %s1458_s26 = sld [smem:[#allocation3 + $0x24]]  ;;  %s1437_s27 = sld [smem:[#allocation3 + $0x59]] }
  0x37   : > { %v246_v54 = vrot.slane %v239_v51, %v245_v48 }
  0x38   : > { %v267_v55 = vcombine.low %v235_v52, %v236_v53  ;;  %v332_v53 = vstv %s1401_s28  ;;  %s1451_s28 = sld [smem:[#allocation3 + $0x5a]] }
  0x39   : > { %v253_v56 = vrot.slane %v246_v54, %v245_v48  ;;  %v1228_v54 = vstv %s1495_s29  ;;  %s1448_s29 = sld [smem:[#allocation3 + $0x3f]] }
  0x3a   : > { %v274_v57 = vrot.slane %v267_v55, %v245_v48 }
  0x3b   : > { %254 = vrot.lane.b32.xlu0 %v253_v56, %s1567_s24 }
  0x3c   : > { %v281_v58 = vrot.slane %v274_v57, %v245_v48  ;;  %v489_v57 = vstv %s1417_s30  ;;  %s1462_s30 = sld [smem:[#allocation3 + $0x40]] }
  0x3f   : > { %282 = vrot.lane.b32.xlu0 %v281_v58, %s1567_s24  ;;  %s1494_s24 = sld [smem:[#allocation3 + $0x52]]  ;;  %v458_v58 = vstv %s1414_s4  ;;  %s1459_s4 = sld [smem:[#allocation3 + $0x25]] }
  0x45   : > { %v1219_v45 = vstv %s1494_s24  ;;  %s1447_s24 = sld [smem:[#allocation3 + $0x3e]] }
  0xad   : > { %v255_v60 = vpop.permute.xlu0 %254 }
  0xae   : > { %v256_v61 = vrot.slane %v255_v60, 7 }
  0xb0   : > { %v258_v62 = vsel %vm257_vm7, %v256_v61, %v255_v60  ;;  %v591_v61 = vstv %s1428_s5  ;;  %s1473_s5 = sld [smem:[#allocation3 + $0x26]] }
  0xb1   : > { %264 = vst.msk [vmem:[#allocation2] ss:$2 sm:$0x7] %vm263_vm8, %v258_v62  ;;  %v283_v63 = vpop.permute.xlu0 %282  ;;  %v341_v62 = vstv %s1402_s8  ;;  %s1452_s8 = sld [smem:[#allocation3 + $0x5b]] }
  0xb2   : > { %v284_v0 = vrot.slane %v283_v63, 7 }
  0xb4   : > { %v285_v1 = vsel %vm257_vm7, %v284_v0, %v283_v63 }
  0xb5   : > { %288 = vst.msk [vmem:[#allocation2 + $0x1] ss:$2 sm:$0x7] %vm263_vm8, %v285_v1  ;;  %v373_v1 = vstv %s1405_s9  ;;  %s1466_s9 = sld [smem:[#allocation3 + $0x5c]] }
  0xb8   : > { %v1655_v4 = vld [vmem:[#allocation2] ss:$2 sm:$0x7] }
  0xb9   : > { %v510_v5 = vmul.f32 %v509_v2, %v1655_v4  ;;  %v470_v6 = vmul.f32 %v469_v3, %v1655_v4  ;;  %v612_v10 = vmul.f32 %v611_v7, %v1655_v4  ;;  %v652_v14 = vmul.f32 %v651_v12, %v1655_v4 }
  0xba   : > { %v754_v18 = vmul.f32 %v753_v16, %v1655_v4  ;;  %v794_v22 = vmul.f32 %v793_v20, %v1655_v4  ;;  %v896_v26 = vmul.f32 %v895_v24, %v1655_v4  ;;  %v936_v30 = vmul.f32 %v935_v28, %v1655_v4 }
  0xbb   : > { %512 = vrot.lane.b32.xlu0 %v510_v5, %s1568_s6  ;;  %472 = vrot.lane.b32.xlu1 %v470_v6, %s1569_s7  ;;  %v1038_v34 = vmul.f32 %v1037_v32, %v1655_v4  ;;  %v1078_v39 = vmul.f32 %v1077_v37, %v1655_v4  ;;  %v1180_v43 = vmul.f32 %v1179_v41, %v1655_v4  ;;  %v498_v2 = vstv %s1418_s10  ;;  %s1463_s10 = sld [smem:[#allocation3 + $0x41]] }
  0xbc   : > { %v1661_v9 = vld [vmem:[#allocation2 + $0x1] ss:$2 sm:$0x7]  ;;  %v1220_v47 = vmul.f32 %v1219_v45, %v1655_v4  ;;  %v450_v51 = vmul.f32 %v449_v49, %v1655_v4  ;;  %v333_v55 = vmul.f32 %v332_v53, %v1655_v4  ;;  %v490_v59 = vmul.f32 %v489_v57, %v1655_v4 }
  0xbd   : > { %v479_v11 = vmul.f32 %v478_v8, %v1661_v9  ;;  %v519_v15 = vmul.f32 %v518_v13, %v1661_v9  ;;  %v621_v19 = vmul.f32 %v620_v17, %v1661_v9  ;;  %v661_v23 = vmul.f32 %v660_v21, %v1661_v9 }
  0xbe   : > { %v763_v27 = vmul.f32 %v762_v25, %v1661_v9  ;;  %v803_v31 = vmul.f32 %v802_v29, %v1661_v9  ;;  %v905_v36 = vmul.f32 %v904_v33, %v1661_v9  ;;  %v945_v40 = vmul.f32 %v944_v38, %v1661_v9 }
  0xbf   : > { %614 = vrot.lane.b32.xlu0 %v612_v10, %s1569_s7  ;;  %481 = vrot.lane.b32.xlu1 %v479_v11, %s1569_s7  ;;  %v1047_v44 = vmul.f32 %v1046_v42, %v1661_v9  ;;  %v1087_v48 = vmul.f32 %v1086_v46, %v1661_v9  ;;  %v1189_v52 = vmul.f32 %v1188_v50, %v1661_v9  ;;  %v529_v6 = vstv %s1421_s11  ;;  %s1477_s11 = sld [smem:[#allocation3 + $0x42]] }
  0xc0   : > { %v1229_v56 = vmul.f32 %v1228_v54, %v1661_v9  ;;  %v459_v60 = vmul.f32 %v458_v58, %v1661_v9  ;;  %v592_v63 = vmul.f32 %v591_v61, %v1655_v4  ;;  %v342_v0 = vmul.f32 %v341_v62, %v1661_v9 }
  0xc1   : > { %v374_v3 = vmul.f32 %v373_v1, %v1655_v4  ;;  %v499_v5 = vmul.f32 %v498_v2, %v1661_v9  ;;  %v600_v7 = vstv %s1429_s14  ;;  %v530_v8 = vmul.f32 %v529_v6, %v1655_v4  ;;  %s1474_s14 = sld [smem:[#allocation3 + $0x27]] }
  0xc2   : > { %v601_v10 = vmul.f32 %v600_v7, %v1661_v9  ;;  %v631_v11 = vstv %s1432_s15  ;;  %v382_v12 = vstv %s1406_s16  ;;  %v538_v16 = vstv %s1422_s18  ;;  %s1488_s15 = sld [smem:[#allocation3 + $0x28]]  ;;  %s1467_s16 = sld [smem:[#allocation3 + $0x5d]] }
  0xc3   : > { %654 = vrot.lane.b32.xlu0 %v652_v14, %s1568_s6  ;;  %521 = vrot.lane.b32.xlu1 %v519_v15, %s1568_s6  ;;  %v632_v13 = vmul.f32 %v631_v11, %v1655_v4  ;;  %v383_v14 = vmul.f32 %v382_v12, %v1661_v9  ;;  %v733_v15 = vstv %s1443_s17  ;;  %v640_v20 = vstv %s1433_s21  ;;  %s1481_s17 = sld [smem:[#allocation3 + $0x5e]]  ;;  %s1478_s18 = sld [smem:[#allocation3 + $0x43]] }
  0xc4   : > { %v734_v17 = vmul.f32 %v733_v15, %v1655_v4  ;;  %v742_v24 = vstv %s1444_s25  ;;  %v680_v28 = vstv %s1437_s27  ;;  %v782_v32 = vstv %s1448_s29  ;;  %s1489_s21 = sld [smem:[#allocation3 + $0x29]]  ;;  %s1769_s25 = sld [smem:[#allocation3 + $0x60]] }
  0xc5   : > { %v884_v37 = vstv %s1459_s4  ;;  %v822_v41 = vstv %s1452_s8  ;;  %v924_v45 = vstv %s1463_s10  ;;  %s1777_s27 = sld [smem:[#allocation3 + $0x12]]  ;;  %s1785_s29 = sld [smem:[#allocation3 + $0x11]] }
  0xc6   : > { %s1797_s4 = sld [smem:[#allocation3 + $0x13]]  ;;  %s1571_s8 = smov 112  }
  0xc7   : > { %756 = vrot.lane.b32.xlu0 %v754_v18, %s1569_s7  ;;  %623 = vrot.lane.b32.xlu1 %v621_v19, %s1569_s7  ;;  %v539_v18 = vmul.f32 %v538_v16, %v1661_v9  ;;  %v671_v19 = vstv %s1436_s19  ;;  %v1026_v49 = vstv %s1474_s14  ;;  %s1492_s19 = sld [smem:[#allocation3 + $0x44]]  ;;  %s1822_s10 = sld [smem:[#allocation3 + $0x16]] }
  0xc8   : > { %v672_v21 = vmul.f32 %v671_v19, %v1655_v4  ;;  %v964_v53 = vstv %s1467_s16  ;;  %s1471_s14 = sld [smem:[#allocation3 + $0x18]]  ;;  %s1845_s16 = sld [smem:[#allocation3 + $0x1a]] }
  0xc9   : > { %v1066_v57 = vstv %s1478_s18  ;;  %s1859_s18 = sld [smem:[#allocation3 + $0x1b]] }
  0xca   : > { %v1168_v61 = vstv %s1489_s21  ;;  %s1869_s21 = sld [smem:[#allocation3 + $0x38]] }
  0xcb   : > { %796 = vrot.lane.b32.xlu0 %v794_v22, %s1568_s6  ;;  %663 = vrot.lane.b32.xlu1 %v661_v23, %s1568_s6  ;;  %v641_v22 = vmul.f32 %v640_v20, %v1661_v9  ;;  %v773_v23 = vstv %s1447_s24  ;;  %s1411_s24 = sld [smem:[#allocation3 + $0x10]]  ;;  %v1169_v2 = vmul.f32 %v1168_v61, %v1661_v9  ;;  %v583_v16 = vstv %s1777_s27  ;;  %s1887_s27 = sld [smem:[#allocation3 + $0x4]] }
  0xcc   : > { %v774_v25 = vmul.f32 %v773_v23, %v1655_v4  ;;  %v584_v23 = vmul.f32 %v583_v16, %v1655_v4 }
  0xcf   : > { %898 = vrot.lane.b32.xlu0 %v896_v26, %s1569_s7  ;;  %765 = vrot.lane.b32.xlu1 %v763_v27, %s1569_s7  ;;  %v743_v26 = vmul.f32 %v742_v24, %v1661_v9  ;;  %v875_v27 = vstv %s1458_s26  ;;  %s1771_s26 = sld [smem:[#allocation3 + $0x5f]] }
  0xd0   : > { %v876_v29 = vmul.f32 %v875_v27, %v1655_v4  ;;  %v444_v27 = vstv %s1785_s29  ;;  %s1894_s29 = sld [smem:[#allocation3 + $0x39]] }
  0xd1   : > { %v441_v62 = vstv %s1411_s24  ;;  %s1874_s24 = sld [smem:[#allocation3 + $0x3]] }
  0xd2   : > { %v442_v7 = vmul.f32 %v441_v62, %v1655_v4 }
  0xd3   : > { %938 = vrot.lane.b32.xlu0 %v936_v30, %s1568_s6  ;;  %805 = vrot.lane.b32.xlu1 %v803_v31, %s1568_s6  ;;  %v681_v30 = vmul.f32 %v680_v28, %v1661_v9  ;;  %v813_v31 = vstv %s1451_s28  ;;  %s1779_s28 = sld [smem:[#allocation3 + $0x45]] }
  0xd4   : > { %v814_v33 = vmul.f32 %v813_v31, %v1655_v4 }
  0xd5   : > { %v1106_v6 = vstv %s1771_s26  ;;  %s1880_s26 = sld [smem:[#allocation3 + $0x54]] }
  0xd6   : > { %v1107_v15 = vmul.f32 %v1106_v6, %v1661_v9 }
  0xd7   : > { %1040 = vrot.lane.b32.xlu0 %v1038_v34, %s1569_s7  ;;  %907 = vrot.lane.b32.xlu1 %v905_v36, %s1569_s7  ;;  %v783_v34 = vmul.f32 %v782_v32, %v1661_v9  ;;  %v915_v36 = vstv %s1462_s30  ;;  %s1789_s30 = sld [smem:[#allocation3 + $0x61]] }
  0xd8   : > { %v916_v38 = vmul.f32 %v915_v36, %v1655_v4 }
  0xdb   : > { %1080 = vrot.lane.b32.xlu0 %v1078_v39, %s1568_s6  ;;  %947 = vrot.lane.b32.xlu1 %v945_v40, %s1568_s6  ;;  %v885_v39 = vmul.f32 %v884_v37, %v1661_v9  ;;  %v1017_v40 = vstv %s1473_s5  ;;  %s1801_s5 = sld [smem:[#allocation3 + $0x14]]  ;;  %v586_v37 = vstv %s1797_s4  ;;  %s1910_s4 = sld [smem:[#allocation3 + $0x5]] }
  0xdc   : > { %v1018_v42 = vmul.f32 %v1017_v40, %v1655_v4 }
  0xdf   : > { %1182 = vrot.lane.b32.xlu0 %v1180_v43, %s1569_s7  ;;  %1049 = vrot.lane.b32.xlu1 %v1047_v44, %s1569_s7  ;;  %v823_v43 = vmul.f32 %v822_v41, %v1661_v9  ;;  %v955_v44 = vstv %s1466_s9  ;;  %s1820_s9 = sld [smem:[#allocation3 + $0x15]] }
  0xe0   : > { %v956_v46 = vmul.f32 %v955_v44, %v1655_v4 }
  0xe3   : > { %1222 = vrot.lane.b32.xlu0 %v1220_v47, %s1568_s6  ;;  %1089 = vrot.lane.b32.xlu1 %v1087_v48, %s1568_s6  ;;  %v925_v47 = vmul.f32 %v924_v45, %v1661_v9  ;;  %v1057_v48 = vstv %s1477_s11  ;;  %s1457_s11 = sld [smem:[#allocation3 + $0x17]] }
  0xe4   : > { %v1058_v50 = vmul.f32 %v1057_v48, %v1655_v4 }
  0xe7   : > { %452 = vrot.lane.b32.xlu0 %v450_v51, %s1569_s7  ;;  %1191 = vrot.lane.b32.xlu1 %v1189_v52, %s1569_s7  ;;  %v1027_v51 = vmul.f32 %v1026_v49, %v1661_v9  ;;  %v1159_v52 = vstv %s1488_s15  ;;  %v587_v49 = vmul.f32 %v586_v37, %v1661_v9  ;;  %s1843_s15 = sld [smem:[#allocation3 + $0x19]] }
  0xe8   : > { %v1160_v54 = vmul.f32 %v1159_v52, %v1655_v4 }
  0xeb   : > { %335 = vrot.lane.b32.xlu0 %v333_v55, %s1569_s7  ;;  %1231 = vrot.lane.b32.xlu1 %v1229_v56, %s1568_s6  ;;  %v965_v55 = vmul.f32 %v964_v53, %v1661_v9  ;;  %v1097_v56 = vstv %s1481_s17  ;;  %s1855_s17 = sld [smem:[#allocation3 + $0x2]] }
  0xec   : > { %v1098_v58 = vmul.f32 %v1097_v56, %v1655_v4 }
  0xef   : > { %492 = vrot.lane.b32.xlu0 %v490_v59, %s1568_s6  ;;  %461 = vrot.lane.b32.xlu1 %v459_v60, %s1569_s7  ;;  %v1067_v59 = vmul.f32 %v1066_v57, %v1661_v9  ;;  %v1199_v60 = vstv %s1492_s19  ;;  %s1861_s19 = sld [smem:[#allocation3 + $0x1c]] }
  0xf0   : > { %v1200_v1 = vmul.f32 %v1199_v60, %v1655_v4 }
  0xf3   : > { %594 = vrot.lane.b32.xlu0 %v592_v63, %s1569_s7  ;;  %344 = vrot.lane.b32.xlu1 %v342_v0, %s1569_s7 }
  0xf7   : > { %376 = vrot.lane.b32.xlu0 %v374_v3, %s1568_s6  ;;  %501 = vrot.lane.b32.xlu1 %v499_v5, %s1568_s6  ;;  %v1239_v5 = vstv %s1769_s25  ;;  %s1878_s25 = sld [smem:[#allocation3 + $0x1d]] }
  0xfb   : > { %532 = vrot.lane.b32.xlu0 %v530_v8, %s1570_s22  ;;  %603 = vrot.lane.b32.xlu1 %v601_v10, %s1569_s7 }
  0xff   : > { %634 = vrot.lane.b32.xlu0 %v632_v13, %s1568_s6  ;;  %385 = vrot.lane.b32.xlu1 %v383_v14, %s1568_s6  ;;  %v1240_v14 = vmul.f32 %v1239_v5, %v1655_v4 }
 0x103   : > { %736 = vrot.lane.b32.xlu0 %v734_v17, %s1569_s7  ;;  %541 = vrot.lane.b32.xlu1 %v539_v18, %s1570_s22  ;;  %v1208_v18 = vstv %s1779_s28  ;;  %s1891_s28 = sld [smem:[#allocation3 + $0xe]] }
 0x107   : > { %674 = vrot.lane.b32.xlu0 %v672_v21, %s1570_s22  ;;  %643 = vrot.lane.b32.xlu1 %v641_v22, %s1568_s6 }
 0x10b   : > { %776 = vrot.lane.b32.xlu0 %v774_v25, %s1568_s6  ;;  %745 = vrot.lane.b32.xlu1 %v743_v26, %s1569_s7  ;;  %v1209_v26 = vmul.f32 %v1208_v18, %v1661_v9 }
 0x10f   : > { %878 = vrot.lane.b32.xlu0 %v876_v29, %s1569_s7  ;;  %683 = vrot.lane.b32.xlu1 %v681_v30, %s1570_s22  ;;  %v1248_v30 = vstv %s1789_s30  ;;  %s1902_s30 = sld [smem:[#allocation3 + $0x55]] }
 0x110   : > { %v1249_v40 = vmul.f32 %v1248_v30, %v1661_v9 }
 0x113   : > { %816 = vrot.lane.b32.xlu0 %v814_v33, %s1570_s22  ;;  %785 = vrot.lane.b32.xlu1 %v783_v34, %s1568_s6  ;;  %v445_v34 = vmul.f32 %v444_v27, %v1661_v9 }
 0x117   : > { %918 = vrot.lane.b32.xlu0 %v916_v38, %s1568_s6  ;;  %887 = vrot.lane.b32.xlu1 %v885_v39, %s1569_s7 }
 0x11b   : > { %1020 = vrot.lane.b32.xlu0 %v1018_v42, %s1569_s7  ;;  %825 = vrot.lane.b32.xlu1 %v823_v43, %s1570_s22  ;;  %v725_v43 = vstv %s1801_s5  ;;  %s1917_s5 = sld [smem:[#allocation3 + $0xf]] }
 0x11f   : > { %958 = vrot.lane.b32.xlu0 %v956_v46, %s1570_s22  ;;  %927 = vrot.lane.b32.xlu1 %v925_v47, %s1568_s6 }
 0x123   : > { %1060 = vrot.lane.b32.xlu0 %v1058_v50, %s1568_s6  ;;  %1029 = vrot.lane.b32.xlu1 %v1027_v51, %s1569_s7  ;;  %v726_v50 = vmul.f32 %v725_v43, %v1655_v4 }
 0x127   : > { %1162 = vrot.lane.b32.xlu0 %v1160_v54, %s1569_s7  ;;  %967 = vrot.lane.b32.xlu1 %v965_v55, %s1570_s22 }
 0x12b   : > { %1100 = vrot.lane.b32.xlu0 %v1098_v58, %s1570_s22  ;;  %1069 = vrot.lane.b32.xlu1 %v1067_v59, %s1568_s6 }
 0x12d   : > { %v473_v63 = vpop.permute.xlu1 %472  ;;  %v513_v0 = vpop.permute.xlu0 %512 }
 0x12e   : > { %v474_v3 = vrot.slane %v473_v63, 1  ;;  %v514_v10 = vrot.slane %v513_v0, 1 }
 0x12f   : > { %1202 = vrot.lane.b32.xlu0 %v1200_v1, %s1568_s6  ;;  %1171 = vrot.lane.b32.xlu1 %v1169_v2, %s1569_s7  ;;  %v867_v1 = vstv %s1822_s10  ;;  %s2048_s10 = sld [smem:[#allocation3 + $0xa]] }
 0x130   : > { %v475_v8 = vsel %vm317_vm9, %v473_v63, %v474_v3  ;;  %v515_v19 = vsel %vm358_vm10, %v513_v0, %v514_v10  ;;  %v728_v63 = vstv %s1820_s9  ;;  %s1572_s9 = smov 127  }
 0x131   : > { %v477_v11 = vadd.f32 %v475_v8, %v442_v7  ;;  %v482_v12 = vpop.permute.xlu1 %481  ;;  %v615_v13 = vpop.permute.xlu0 %614  ;;  %v729_v6 = vmul.f32 %v728_v63, %v1661_v9  ;;  %v868_v7 = vmul.f32 %v867_v1, %v1655_v4  ;;  %v1154_v63 = vstv %s1859_s18  ;;  %s1575_s18 = smov 124  }
 0x132   : > { %v616_v17 = vrot.slane %v615_v13, 1  ;;  %v483_v20 = vrot.slane %v482_v12, 1 }
 0x133   : > { %1242 = vrot.lane.b32.xlu0 %v1240_v14, %s1570_s22  ;;  %1109 = vrot.lane.b32.xlu1 %v1107_v15, %s1570_s22  ;;  %v517_v22 = vadd.f32 %v515_v19, %v477_v11 }
 0x134   : > { %v617_v21 = vsel %vm317_vm9, %v615_v13, %v616_v17  ;;  %v484_v32 = vsel %vm317_vm9, %v482_v12, %v483_v20 }
 0x135   : > { %v522_v24 = vpop.permute.xlu1 %521  ;;  %v655_v25 = vpop.permute.xlu0 %654  ;;  %v619_v31 = vadd.f32 %v617_v21, %v584_v23  ;;  %v486_v45 = vadd.f32 %v484_v32, %v445_v34  ;;  %v870_v21 = vstv %s1457_s11  ;;  %v1009_v23 = vstv %s1471_s14  ;;  %s2050_s11 = sld [smem:[#allocation3 + $0xb]]  ;;  %s1573_s14 = smov 126  }
 0x136   : > { %v523_v28 = vrot.slane %v522_v24, 1  ;;  %v656_v29 = vrot.slane %v655_v25, 1  ;;  %v871_v27 = vmul.f32 %v870_v21, %v1661_v9 }
 0x137   : > { %1211 = vrot.lane.b32.xlu1 %v1209_v26, %s1568_s6  ;;  %550 = vrot.lane.b32.xlu0 %v517_v22, %s1571_s8 }
 0x138   : > { %v657_v33 = vsel %vm358_vm10, %v655_v25, %v656_v29  ;;  %v524_v41 = vsel %vm358_vm10, %v522_v24, %v523_v28  ;;  %v1010_v28 = vmul.f32 %v1009_v23, %v1655_v4 }
 0x139   : > { %v659_v36 = vadd.f32 %v657_v33, %v619_v31  ;;  %v624_v38 = vpop.permute.xlu1 %623  ;;  %v757_v39 = vpop.permute.xlu0 %756  ;;  %v526_v48 = vadd.f32 %v524_v41, %v486_v45 }
 0x13a   : > { %v625_v42 = vrot.slane %v624_v38, 1  ;;  %v758_v44 = vrot.slane %v757_v39, 1 }
 0x13b   : > { %1251 = vrot.lane.b32.xlu1 %v1249_v40, %s1570_s22  ;;  %692 = vrot.lane.b32.xlu0 %v659_v36, %s1571_s8 }
 0x13c   : > { %v626_v46 = vsel %vm317_vm9, %v624_v38, %v625_v42  ;;  %v759_v47 = vsel %vm317_vm9, %v757_v39, %v758_v44  ;;  %v1012_v42 = vstv %s1843_s15  ;;  %v1151_v44 = vstv %s1845_s16  ;;  %s2076_s15 = sld [smem:[#allocation3 + $0xc]]  ;;  %s2078_s16 = sld [smem:[#allocation3 + $0xd]] }
 0x13d   : > { %v664_v51 = vpop.permute.xlu1 %663  ;;  %v797_v52 = vpop.permute.xlu0 %796  ;;  %v628_v55 = vadd.f32 %v626_v46, %v587_v49  ;;  %v761_v56 = vadd.f32 %v759_v47, %v726_v50  ;;  %v1152_v49 = vmul.f32 %v1151_v44, %v1655_v4 }
 0x13e   : > { %v665_v53 = vrot.slane %v664_v51, 1  ;;  %v798_v54 = vrot.slane %v797_v52, 1 }
 0x13f   : > { %557 = vrot.lane.b32.xlu1 %v526_v48, %s1571_s8  ;;  %v1013_v48 = vmul.f32 %v1012_v42, %v1661_v9 }
 0x140   : > { %v666_v57 = vsel %vm358_vm10, %v664_v51, %v665_v53  ;;  %v799_v58 = vsel %vm358_vm10, %v797_v52, %v798_v54 }
 0x141   : > { %v668_v59 = vadd.f32 %v666_v57, %v628_v55  ;;  %v801_v60 = vadd.f32 %v799_v58, %v761_v56  ;;  %v766_v61 = vpop.permute.xlu1 %765  ;;  %v899_v62 = vpop.permute.xlu0 %898  ;;  %v433_v58 = vstv %s1855_s17  ;;  %s1574_s17 = smov 125  }
 0x142   : > { %v767_v0 = vrot.slane %v766_v61, 1  ;;  %v900_v2 = vrot.slane %v899_v62, 1 }
 0x143   : > { %699 = vrot.lane.b32.xlu1 %v668_v59, %s1571_s8  ;;  %834 = vrot.lane.b32.xlu0 %v801_v60, %s1571_s8 }
 0x144   : > { %v768_v3 = vsel %vm317_vm9, %v766_v61, %v767_v0  ;;  %v901_v5 = vsel %vm317_vm9, %v899_v62, %v900_v2  ;;  %v311_v2 = vstv %s1861_s19  ;;  %s1576_s19 = smov 123  }
 0x145   : > { %v806_v8 = vpop.permute.xlu1 %805  ;;  %v939_v10 = vpop.permute.xlu0 %938  ;;  %v770_v13 = vadd.f32 %v768_v3, %v729_v6  ;;  %v903_v14 = vadd.f32 %v901_v5, %v868_v7  ;;  %v434_v3 = vmul.f32 %v433_v58, %v1655_v4  ;;  %v1155_v7 = vmul.f32 %v1154_v63, %v1661_v9 }
 0x146   : > { %v807_v11 = vrot.slane %v806_v8, 1  ;;  %v940_v12 = vrot.slane %v939_v10, 1 }
 0x148   : > { %v808_v15 = vsel %vm358_vm10, %v806_v8, %v807_v11  ;;  %v941_v16 = vsel %vm358_vm10, %v939_v10, %v940_v12  ;;  %v312_v12 = vmul.f32 %v311_v2, %v1655_v4 }
 0x149   : > { %v810_v17 = vadd.f32 %v808_v15, %v770_v13  ;;  %v943_v18 = vadd.f32 %v941_v16, %v903_v14  ;;  %v908_v19 = vpop.permute.xlu1 %907  ;;  %v1041_v20 = vpop.permute.xlu0 %1040  ;;  %v352_v14 = vstv %s1869_s21  ;;  %s1577_s21 = smov 122  }
 0x14a   : > { %v909_v22 = vrot.slane %v908_v19, 1  ;;  %v1042_v24 = vrot.slane %v1041_v20, 1  ;;  %v353_v21 = vmul.f32 %v352_v14, %v1655_v4 }
 0x14b   : > { %841 = vrot.lane.b32.xlu1 %v810_v17, %s1571_s8  ;;  %976 = vrot.lane.b32.xlu0 %v943_v18, %s1571_s8  ;;  %v436_v17 = vstv %s1874_s24  ;;  %s1396_s24 = sld [smem:[#allocation3 + $0x1]] }
 0x14c   : > { %v910_v25 = vsel %vm317_vm9, %v908_v19, %v909_v22  ;;  %v1043_v26 = vsel %vm317_vm9, %v1041_v20, %v1042_v24  ;;  %v321_v24 = vstv %s1878_s25  ;;  %s289_s25 = sld [smem:[#allocation3]] }
 0x14d   : > { %v948_v29 = vpop.permute.xlu1 %947  ;;  %v1081_v30 = vpop.permute.xlu0 %1080  ;;  %v912_v33 = vadd.f32 %v910_v25, %v871_v27  ;;  %v1045_v34 = vadd.f32 %v1043_v26, %v1010_v28  ;;  %v393_v25 = vstv %s1880_s26  ;;  %v437_v26 = vmul.f32 %v436_v17, %v1661_v9 }
 0x14e   : > { %v949_v31 = vrot.slane %v948_v29, 1  ;;  %v1082_v32 = vrot.slane %v1081_v30, 1 }
 0x150   : > { %v950_v36 = vsel %vm358_vm10, %v948_v29, %v949_v31  ;;  %v1083_v37 = vsel %vm358_vm10, %v1081_v30, %v1082_v32  ;;  %v575_v30 = vstv %s1887_s27 }
 0x151   : > { %v952_v38 = vadd.f32 %v950_v36, %v912_v33  ;;  %v1085_v39 = vadd.f32 %v1083_v37, %v1045_v34  ;;  %v1050_v40 = vpop.permute.xlu1 %1049  ;;  %v1183_v41 = vpop.permute.xlu0 %1182  ;;  %v322_v36 = vmul.f32 %v321_v24, %v1661_v9  ;;  %v394_v37 = vmul.f32 %v393_v25, %v1655_v4 }
 0x152   : > { %v1051_v43 = vrot.slane %v1050_v40, 1  ;;  %v1184_v45 = vrot.slane %v1183_v41, 1 }
 0x153   : > { %983 = vrot.lane.b32.xlu1 %v952_v38, %s1571_s8  ;;  %1118 = vrot.lane.b32.xlu0 %v1085_v39, %s1571_s8  ;;  %v303_v38 = vstv %s1891_s28 }
 0x154   : > { %v1052_v46 = vsel %vm317_vm9, %v1050_v40, %v1051_v43  ;;  %v1185_v47 = vsel %vm317_vm9, %v1183_v41, %v1184_v45  ;;  %v362_v40 = vstv %s1894_s29  ;;  %v576_v41 = vmul.f32 %v575_v30, %v1655_v4 }
 0x155   : > { %v1090_v50 = vpop.permute.xlu1 %1089  ;;  %v1223_v51 = vpop.permute.xlu0 %1222  ;;  %v1054_v54 = vadd.f32 %v1052_v46, %v1013_v48  ;;  %v1187_v55 = vadd.f32 %v1185_v47, %v1152_v49  ;;  %v304_v44 = vmul.f32 %v303_v38, %v1655_v4  ;;  %v363_v48 = vmul.f32 %v362_v40, %v1661_v9 }
 0x156   : > { %v1091_v52 = vrot.slane %v1090_v50, 1  ;;  %v1224_v53 = vrot.slane %v1223_v51, 1 }
 0x158   : > { %v1092_v56 = vsel %vm358_vm10, %v1090_v50, %v1091_v52  ;;  %v1225_v57 = vsel %vm358_vm10, %v1223_v51, %v1224_v53  ;;  %v403_v51 = vstv %s1902_s30 }
 0x159   : > { %v1094_v59 = vadd.f32 %v1092_v56, %v1054_v54  ;;  %v1227_v60 = vadd.f32 %v1225_v57, %v1187_v55  ;;  %v1192_v61 = vpop.permute.xlu1 %1191  ;;  %v453_v62 = vpop.permute.xlu0 %452  ;;  %v578_v56 = vstv %s1910_s4 }
 0x15a   : > { %v1193_v0 = vrot.slane %v1192_v61, 1  ;;  %v454_v1 = vrot.slane %v453_v62, 1  ;;  %v579_v63 = vmul.f32 %v578_v56, %v1661_v9 }
 0x15b   : > { %1125 = vrot.lane.b32.xlu1 %v1094_v59, %s1571_s8  ;;  %1260 = vrot.lane.b32.xlu0 %v1227_v60, %s1571_s8  ;;  %v404_v60 = vmul.f32 %v403_v51, %v1661_v9 }
 0x15c   : > { %v1194_v5 = vsel %vm317_vm9, %v1192_v61, %v1193_v0  ;;  %v455_v6 = vsel %vm317_vm9, %v453_v62, %v454_v1  ;;  %v306_v61 = vstv %s1917_s5 }
 0x15d   : > { %v457_v8 = vadd.f32 %v455_v6, %v434_v3  ;;  %v1232_v10 = vpop.permute.xlu1 %1231  ;;  %v336_v11 = vpop.permute.xlu0 %335  ;;  %v1196_v15 = vadd.f32 %v1194_v5, %v1155_v7  ;;  %v307_v2 = vmul.f32 %v306_v61, %v1661_v9 }
 0x15e   : > { %v1233_v13 = vrot.slane %v1232_v10, 1  ;;  %v337_v27 = vrot.slane %v336_v11, 1 }
 0x15f   : > { %314 = vrot.lane.b32.xlu0 %v312_v12, %s1569_s7 }
 0x160   : > { %v1234_v16 = vsel %vm358_vm10, %v1232_v10, %v1233_v13  ;;  %v338_v42 = vsel %vm317_vm9, %v336_v11, %v337_v27 }
 0x161   : > { %v1236_v18 = vadd.f32 %v1234_v16, %v1196_v15  ;;  %v462_v19 = vpop.permute.xlu1 %461  ;;  %v493_v20 = vpop.permute.xlu0 %492  ;;  %v340_v52 = vadd.f32 %v338_v42, %v304_v44 }
 0x162   : > { %v463_v22 = vrot.slane %v462_v19, 1  ;;  %v494_v23 = vrot.slane %v493_v20, 1 }
 0x163   : > { %1267 = vrot.lane.b32.xlu1 %v1236_v18, %s1571_s8  ;;  %355 = vrot.lane.b32.xlu0 %v353_v21, %s1568_s6 }
 0x164   : > { %v464_v28 = vsel %vm317_vm9, %v462_v19, %v463_v22  ;;  %v495_v29 = vsel %vm358_vm10, %v493_v20, %v494_v23 }
 0x165   : > { %v466_v31 = vadd.f32 %v464_v28, %v437_v26  ;;  %v1912_v32 = vadd.f32 %v495_v29, %v457_v8  ;;  %v345_v33 = vpop.permute.xlu1 %344  ;;  %v595_v34 = vpop.permute.xlu0 %594 }
 0x166   : > { %v596_v39 = vrot.slane %v595_v34, 1  ;;  %v346_v53 = vrot.slane %v345_v33, 1 }
 0x167   : > { %324 = vrot.lane.b32.xlu1 %v322_v36, %s1569_s7  ;;  %396 = vrot.lane.b32.xlu0 %v394_v37, %s1570_s22  ;;  %s1996_s7 = sld [smem:[#allocation3 + $0x7]] }
 0x168   : > { %v597_v43 = vsel %vm317_vm9, %v595_v34, %v596_v39  ;;  %v347_v0 = vsel %vm317_vm9, %v345_v33, %v346_v53 }
 0x169   : > { %v1926_v45 = vadd.f32 %v597_v43, %v576_v41  ;;  %v502_v46 = vpop.permute.xlu1 %501  ;;  %v377_v47 = vpop.permute.xlu0 %376  ;;  %v349_v8 = vadd.f32 %v347_v0, %v307_v2 }
 0x16a   : > { %v503_v49 = vrot.slane %v502_v46, 1  ;;  %v378_v50 = vrot.slane %v377_v47, 1 }
 0x16b   : > { %365 = vrot.lane.b32.xlu1 %v363_v48, %s1568_s6  ;;  %s1992_s6 = sld [smem:[#allocation3 + $0x6]] }
 0x16c   : > { %v504_v54 = vsel %vm358_vm10, %v502_v46, %v503_v49  ;;  %v379_v55 = vsel %vm358_vm10, %v377_v47, %v378_v50 }
 0x16d   : > { %v1934_v4 = vadd.f32 %v504_v54, %v466_v31  ;;  %v381_v57 = vadd.f32 %v379_v55, %v340_v52  ;;  %v604_v58 = vpop.permute.xlu1 %603  ;;  %v533_v59 = vpop.permute.xlu0 %532 }
 0x16e   : > { %v605_v62 = vrot.slane %v604_v58, 1  ;;  %v534_v41 = vrot.slane %v533_v59, 1 }
 0x16f   : > { %406 = vrot.lane.b32.xlu1 %v404_v60, %s1570_s22  ;;  %414 = vrot.lane.b32.xlu0 %v381_v57, %s1571_s8  ;;  %s2016_s22 = sld [smem:[#allocation3 + $0x8]] }
 0x170   : > { %v606_v1 = vsel %vm317_vm9, %v604_v58, %v605_v62  ;;  %v535_v49 = vsel %vm399_vm11, %v533_v59, %v534_v41 }
 0x171   : > { %v1944_v3 = vadd.f32 %v606_v1, %v579_v63  ;;  %v386_v5 = vpop.permute.xlu1 %385  ;;  %v635_v6 = vpop.permute.xlu0 %634  ;;  %v717_v54 = vstv %s1992_s6  ;;  %v537_v61 = vadd.f32 %v535_v49, %v1912_v32  ;;  %v720_v63 = vstv %s1996_s7  ;;  %v2033_v49 = vld [vmem:[#allocation2 + $0x1] ss:$2 sm:$0x7] }
 0x172   : > { %v387_v7 = vrot.slane %v386_v5, 1  ;;  %v636_v43 = vrot.slane %v635_v6, 1 }
 0x174   : > { %v388_v10 = vsel %vm358_vm10, %v386_v5, %v387_v7  ;;  %v637_v53 = vsel %vm358_vm10, %v635_v6, %v636_v43 }
 0x175   : > { %v390_v11 = vadd.f32 %v388_v10, %v349_v8  ;;  %v542_v12 = vpop.permute.xlu1 %541  ;;  %v1947_v13 = vpop.permute.xlu0 %736  ;;  %v639_v6 = vadd.f32 %v637_v53, %v1926_v45 }
 0x176   : > { %v543_v42 = vrot.slane %v542_v12, 1  ;;  %v738_v59 = vrot.slane %v1947_v13, 1 }
 0x177   : > { %422 = vrot.lane.b32.xlu1 %v390_v11, %s1571_s8  ;;  %s2018_s8 = sld [smem:[#allocation3 + $0x9]] }
 0x178   : > { %v544_v50 = vsel %vm399_vm11, %v542_v12, %v543_v42 }
 0x179   : > { %v644_v14 = vpop.permute.xlu1 %643  ;;  %v675_v15 = vpop.permute.xlu0 %674  ;;  %v546_v62 = vadd.f32 %v544_v50, %v1934_v4 }
 0x17a   : > { %v645_v46 = vrot.slane %v644_v14, 1  ;;  %v676_v51 = vrot.slane %v675_v15, 1 }
 0x17c   : > { %v646_v56 = vsel %vm358_vm10, %v644_v14, %v645_v46  ;;  %v677_v0 = vsel %vm399_vm11, %v675_v15, %v676_v51  ;;  %v739_v15 = vsel %vm317_vm9, %v1947_v13, %v738_v59  ;;  %v721_v13 = vmul.f32 %v2033_v49, %v720_v63 }
 0x17d   : > { %v1950_v16 = vpop.permute.xlu1 %745  ;;  %v1952_v17 = vpop.permute.xlu0 %776  ;;  %v648_v7 = vadd.f32 %v646_v56, %v1944_v3  ;;  %v679_v45 = vadd.f32 %v677_v0, %v639_v6  ;;  %v859_v59 = vstv %s2016_s22  ;;  %v862_v63 = vstv %s2018_s8 }
 0x17e   : > { %v747_v1 = vrot.slane %v1950_v16, 1  ;;  %v778_v10 = vrot.slane %v1952_v17, 1 }
 0x180   : > { %v748_v41 = vsel %vm317_vm9, %v1950_v16, %v747_v1  ;;  %v779_v16 = vsel %vm358_vm10, %v1952_v17, %v778_v10 }
 0x181   : > { %v684_v9 = vpop.permute.xlu1 %683  ;;  %v1954_v18 = vpop.permute.xlu0 %878  ;;  %v750_v56 = vadd.f32 %v748_v41, %v721_v13  ;;  %v1001_v13 = vstv %s2048_s10 }
 0x182   : > { %v685_v52 = vrot.slane %v684_v9, 1 }
 0x184   : > { %v686_v2 = vsel %vm399_vm11, %v684_v9, %v685_v52 }
 0x185   : > { %v1956_v19 = vpop.permute.xlu1 %785  ;;  %v1958_v20 = vpop.permute.xlu0 %816  ;;  %v688_v9 = vadd.f32 %v686_v2, %v648_v7 }
 0x186   : > { %v787_v11 = vrot.slane %v1956_v19, 1  ;;  %v818_v42 = vrot.slane %v1958_v20, 1 }
 0x188   : > { %v788_v52 = vsel %vm358_vm10, %v1956_v19, %v787_v11 }
 0x189   : > { %v1960_v21 = vpop.permute.xlu1 %887  ;;  %v1962_v22 = vpop.permute.xlu0 %918  ;;  %v790_v17 = vadd.f32 %v788_v52, %v750_v56 }
 0x18a   : > { %v920_v0 = vrot.slane %v1962_v22, 1 }
 0x18d   : > { %v1964_v23 = vpop.permute.xlu1 %825  ;;  %v1966_v24 = vpop.permute.xlu0 %1020 }
 0x18e   : > { %v827_v43 = vrot.slane %v1964_v23, 1 }
 0x191   : > { %v1968_v25 = vpop.permute.xlu1 %927  ;;  %v1970_v26 = vpop.permute.xlu0 %958 }
 0x195   : > { %v1972_v27 = vpop.permute.xlu1 %1029  ;;  %v1974_v28 = vpop.permute.xlu0 %1060 }
 0x199   : > { %v1976_v29 = vpop.permute.xlu1 %967  ;;  %v1978_v30 = vpop.permute.xlu0 %1162 }
 0x19d   : > { %v1980_v31 = vpop.permute.xlu1 %1069  ;;  %v1982_v33 = vpop.permute.xlu0 %1100 }
 0x1a1   : > { %v1984_v34 = vpop.permute.xlu1 %1171  ;;  %v1986_v36 = vpop.permute.xlu0 %1202 }
 0x1a5   : > { %v1988_v37 = vpop.permute.xlu1 %1109  ;;  %v1990_v38 = vpop.permute.xlu0 %1242 }
 0x1a9   : > { %v1994_v39 = vpop.permute.xlu1 %1211  ;;  %v551_v40 = vpop.permute.xlu0 %550 }
 0x1aa   : > { %v552_v47 = vrot.slane %v551_v40, 1 }
 0x1ac   : > { %v553_v57 = vsel %vm417_vm12, %v551_v40, %v552_v47  ;;  %v2030_v47 = vld [vmem:[#allocation2] ss:$2 sm:$0x7] }
 0x1ad   : > { %v1998_v44 = vpop.permute.xlu1 %1251  ;;  %v693_v48 = vpop.permute.xlu0 %692  ;;  %v555_v32 = vadd.f32 %v553_v57, %v537_v61  ;;  %v828_v61 = vsel %vm399_vm11, %v1964_v23, %v827_v43  ;;  %v860_v11 = vmul.f32 %v2030_v47, %v859_v59  ;;  %v1031_v43 = vrot.slane %v1972_v27, 1 }
 0x1ae   : > { %v694_v58 = vrot.slane %v693_v48, 1  ;;  %v830_v6 = vadd.f32 %v828_v61, %v790_v17  ;;  %v1002_v61 = vmul.f32 %v2030_v47, %v1001_v13 }
 0x1b0   : > { %v695_v12 = vsel %vm417_vm12, %v693_v48, %v694_v58  ;;  %v718_v48 = vmul.f32 %v2030_v47, %v717_v54  ;;  %v880_v54 = vrot.slane %v1954_v18, 1  ;;  %v819_v58 = vsel %vm399_vm11, %v1958_v20, %v818_v42 }
 0x1b1   : > { %v558_v55 = vpop.permute.xlu1 %557  ;;  %v697_v50 = vadd.f32 %v695_v12, %v679_v45  ;;  %v929_v20 = vrot.slane %v1968_v25, 1  ;;  %v863_v12 = vmul.f32 %v2033_v49, %v862_v63 }
 0x1b2   : > { %v559_v60 = vrot.slane %v558_v55, 1  ;;  %v881_v23 = vsel %vm317_vm9, %v1954_v18, %v880_v54  ;;  %v1032_v54 = vsel %vm317_vm9, %v1972_v27, %v1031_v43 }
 0x1b4   : > { %v560_v5 = vsel %vm417_vm12, %v558_v55, %v559_v60  ;;  %v741_v55 = vadd.f32 %v739_v15, %v718_v48  ;;  %v889_v60 = vrot.slane %v1960_v21, 1  ;;  %v921_v15 = vsel %vm358_vm10, %v1962_v22, %v920_v0 }
 0x1b5   : > { %v562_v4 = vadd.f32 %v560_v5, %v546_v62  ;;  %v700_v8 = vpop.permute.xlu1 %699  ;;  %v835_v3 = vpop.permute.xlu0 %834 }
 0x1b6   : > { %v701_v14 = vrot.slane %v700_v8, 1  ;;  %v836_v53 = vrot.slane %v835_v3, 1  ;;  %v781_v62 = vadd.f32 %v779_v16, %v741_v55 }
 0x1b7   : > { %v563_v40 = vadd.f32 %v562_v4, %v555_v32  ;;  %v890_v32 = vsel %vm317_vm9, %v1960_v21, %v889_v60  ;;  %v960_v4 = vrot.slane %v1970_v26, 1  ;;  %v930_v21 = vsel %vm358_vm10, %v1968_v25, %v929_v20 }
 0x1b8   : > { %v702_v46 = vsel %vm417_vm12, %v700_v8, %v701_v14  ;;  %v837_v1 = vsel %vm417_vm12, %v835_v3, %v836_v53  ;;  %v821_v5 = vadd.f32 %v819_v58, %v781_v62  ;;  %v969_v8 = vrot.slane %v1976_v29, 1 }
 0x1b9   : > { %v704_v51 = vadd.f32 %v702_v46, %v688_v9  ;;  %565 = vrot.lane.b32.xlu0 %v563_v40, %s1572_s9  ;;  %v883_v9 = vadd.f32 %v881_v23, %v860_v11  ;;  %v892_v3 = vadd.f32 %v890_v32, %v863_v12  ;;  %v1022_v40 = vrot.slane %v1966_v24, 1 }
 0x1ba   : > { %v839_v14 = vadd.f32 %v837_v1, %v821_v5  ;;  %v961_v42 = vsel %vm399_vm11, %v1970_v26, %v960_v4  ;;  %v970_v46 = vsel %vm399_vm11, %v1976_v29, %v969_v8  ;;  %v1071_v26 = vrot.slane %v1980_v31, 1 }
 0x1bb   : > { %v705_v57 = vadd.f32 %v704_v51, %v697_v50  ;;  %v923_v48 = vadd.f32 %v921_v15, %v883_v9  ;;  %v932_v22 = vadd.f32 %v930_v21, %v892_v3  ;;  %v1004_v50 = vstv %s2050_s11 }
 0x1bc   : > { %v1062_v51 = vrot.slane %v1974_v28, 1  ;;  %v1023_v29 = vsel %vm317_vm9, %v1966_v24, %v1022_v40  ;;  %v1111_v58 = vrot.slane %v1988_v37, 1  ;;  %v1005_v62 = vmul.f32 %v2033_v49, %v1004_v50 }
 0x1bd   : > { %v842_v19 = vpop.permute.xlu1 %841  ;;  %707 = vrot.lane.b32.xlu1 %v705_v57, %s1573_s14  ;;  %v977_v7 = vpop.permute.xlu0 %976  ;;  %v963_v53 = vadd.f32 %v961_v42, %v923_v48  ;;  %v972_v55 = vadd.f32 %v970_v46, %v932_v22  ;;  %v1102_v57 = vrot.slane %v1982_v33, 1  ;;  %v1072_v27 = vsel %vm358_vm10, %v1980_v31, %v1071_v26 }
 0x1be   : > { %v843_v2 = vrot.slane %v842_v19, 1  ;;  %v978_v45 = vrot.slane %v977_v7, 1  ;;  %v1063_v17 = vsel %vm358_vm10, %v1974_v28, %v1062_v51  ;;  %v1034_v0 = vadd.f32 %v1032_v54, %v1005_v62 }
 0x1bf   : > { %v1164_v20 = vrot.slane %v1978_v30, 1  ;;  %v1173_v23 = vrot.slane %v1984_v34, 1  ;;  %v1112_v5 = vsel %vm399_vm11, %v1988_v37, %v1111_v58  ;;  %v1146_v32 = vstv %s2078_s16  ;;  %s184_s16 = scalar_lea.vmem %s2176_s3, %s1501_s20 }
 0x1c0   : > { %v844_v10 = vsel %vm417_vm12, %v842_v19, %v843_v2  ;;  %v979_v16 = vsel %vm417_vm12, %v977_v7, %v978_v45  ;;  %v1025_v19 = vadd.f32 %v1023_v29, %v1002_v61  ;;  %v1103_v2 = vsel %vm399_vm11, %v1982_v33, %v1102_v57  ;;  %v292_v61 = vld [vmem:[#allocation2 + $0x1] ss:$2 sm:$0x3] }
 0x1c1   : > { %v846_v18 = vadd.f32 %v844_v10, %v830_v6  ;;  %v981_v59 = vadd.f32 %v979_v16, %v963_v53  ;;  %v1143_v7 = vstv %s2076_s15  ;;  %v1074_v28 = vadd.f32 %v1072_v27, %v1034_v0 }
 0x1c2   : > { %v1065_v6 = vadd.f32 %v1063_v17, %v1025_v19  ;;  %v1204_v31 = vrot.slane %v1986_v36, 1  ;;  %v1213_v8 = vrot.slane %v1994_v39, 1  ;;  %v1165_v33 = vsel %vm317_vm9, %v1978_v30, %v1164_v20 }
 0x1c3   : > { %v847_v41 = vadd.f32 %v846_v18, %v839_v14  ;;  %v1114_v14 = vadd.f32 %v1112_v5, %v1074_v28  ;;  %v1174_v18 = vsel %vm317_vm9, %v1984_v34, %v1173_v23  ;;  %v1244_v15 = vrot.slane %v1990_v38, 1 }
 0x1c4   : > { %v1105_v12 = vadd.f32 %v1103_v2, %v1065_v6  ;;  %v1253_v21 = vrot.slane %v1998_v44, 1  ;;  %v1144_v9 = vmul.f32 %v2030_v47, %v1143_v7  ;;  %v1147_v3 = vmul.f32 %v2033_v49, %v1146_v32 }
 0x1c5   : > { %v984_v25 = vpop.permute.xlu1 %983  ;;  %849 = vrot.lane.b32.xlu0 %v847_v41, %s1574_s17  ;;  %v1119_v56 = vpop.permute.xlu0 %1118  ;;  %v1205_v30 = vsel %vm358_vm10, %v1986_v36, %v1204_v31  ;;  %v1214_v42 = vsel %vm358_vm10, %v1994_v39, %v1213_v8  ;;  %v1245_v13 = vsel %vm399_vm11, %v1990_v38, %v1244_v15  ;;  %v293_v17 = vstv %s289_s25 }
 0x1c6   : > { %v985_v52 = vrot.slane %v984_v25, 1  ;;  %v1120_v63 = vrot.slane %v1119_v56, 1  ;;  %v1167_v34 = vadd.f32 %v1165_v33, %v1144_v9  ;;  %v1176_v46 = vadd.f32 %v1174_v18, %v1147_v3 }
 0x1c7   : > { %v1254_v47 = vsel %vm399_vm11, %v1998_v44, %v1253_v21 }
 0x1c8   : > { %v986_v60 = vsel %vm417_vm12, %v984_v25, %v985_v52  ;;  %v1121_v10 = vsel %vm417_vm12, %v1119_v56, %v1120_v63  ;;  %v1207_v22 = vadd.f32 %v1205_v30, %v1167_v34  ;;  %v1216_v49 = vadd.f32 %v1214_v42, %v1176_v46  ;;  %v1423_v30 = vld [vmem:[%s2174_s1 + $0x1] ss:$8 sm:$0x3]  ;;  %v412_v46 = vld [vmem:[%s2174_s1] ss:$8 sm:$0x3] }
 0x1c9   : > { %v988_v24 = vadd.f32 %v986_v60, %v972_v55  ;;  %v1123_v40 = vadd.f32 %v1121_v10, %v1105_v12  ;;  %v296_v60 = vstv %s1396_s24 }
 0x1ca   : > { %v1247_v51 = vadd.f32 %v1245_v13, %v1207_v22  ;;  %v1256_v39 = vadd.f32 %v1254_v47, %v1216_v49  ;;  %v297_v0 = vmul.f32 %v296_v60, %v292_v61 }
 0x1cb   : > { %v989_v1 = vadd.f32 %v988_v24, %v981_v59  ;;  %v291_v24 = vld [vmem:[#allocation2] ss:$2 sm:$0x3] }
 0x1cc   : > { %v294_v6 = vmul.f32 %v293_v17, %v291_v24  ;;  %v1294_v24 = vsub.s32 0, %v1646_v35  ;;  %v1298_v17 = vsub.s32 1, %v1646_v35 }
 0x1cd   : > { %v1126_v4 = vpop.permute.xlu1 %1125  ;;  %991 = vrot.lane.b32.xlu1 %v989_v1, %s1575_s18  ;;  %v1261_v37 = vpop.permute.xlu0 %1260 }
 0x1ce   : > { %v1127_v11 = vrot.slane %v1126_v4, 1  ;;  %v1262_v43 = vrot.slane %v1261_v37, 1 }
 0x1d0   : > { %v1128_v45 = vsel %vm417_vm12, %v1126_v4, %v1127_v11  ;;  %v1263_v36 = vsel %vm417_vm12, %v1261_v37, %v1262_v43 }
 0x1d1   : > { %v1130_v41 = vadd.f32 %v1128_v45, %v1114_v14  ;;  %v1265_v16 = vadd.f32 %v1263_v36, %v1247_v51  ;;  %v315_v53 = vpop.permute.xlu0 %314 }
 0x1d2   : > { %v316_v58 = vrot.slane %v315_v53, 1 }
 0x1d3   : > { %v1131_v48 = vadd.f32 %v1130_v41, %v1123_v40 }
 0x1d4   : > { %v318_v1 = vsel %vm317_vm9, %v315_v53, %v316_v58  ;;  %v1498_v58 = vld [vmem:[%s2174_s1 + $0x6] ss:$8 sm:$0x3] }
 0x1d5   : > { %v1268_v50 = vpop.permute.xlu1 %1267  ;;  %1133 = vrot.lane.b32.xlu0 %v1131_v48, %s1576_s19  ;;  %v356_v55 = vpop.permute.xlu0 %355  ;;  %v320_v31 = vadd.f32 %v318_v1, %v294_v6  ;;  %v1438_v48 = vld [vmem:[%s2174_s1 + $0x2] ss:$8 sm:$0x3]  ;;  %v1286_v1 = vld [vmem:[%s1636_s23 + $0x18] sm:$0xff] }
 0x1d6   : > { %v1269_v25 = vrot.slane %v1268_v50, 1  ;;  %v357_v27 = vrot.slane %v356_v55, 1  ;;  %v1290_v6 = vld [vmem:[%s1636_s23 + $0x38] sm:$0xff] }
 0x1d8   : > { %v1270_v26 = vsel %vm417_vm12, %v1268_v50, %v1269_v25  ;;  %v359_v28 = vsel %vm358_vm10, %v356_v55, %v357_v27  ;;  %v1453_v50 = vld [vmem:[%s2174_s1 + $0x3] ss:$8 sm:$0x3] }
 0x1d9   : > { %v1272_v52 = vadd.f32 %v1270_v26, %v1256_v39  ;;  %v325_v38 = vpop.permute.xlu1 %324  ;;  %v397_v57 = vpop.permute.xlu0 %396  ;;  %v361_v12 = vadd.f32 %v359_v28, %v320_v31  ;;  %v1468_v26 = vld [vmem:[%s2174_s1 + $0x4] ss:$8 sm:$0x3] }
 0x1da   : > { %v326_v54 = vrot.slane %v325_v38, 1  ;;  %v398_v2 = vrot.slane %v397_v57, 1 }
 0x1db   : > { %v1273_v29 = vadd.f32 %v1272_v52, %v1265_v16 }
 0x1dc   : > { %v327_v63 = vsel %vm317_vm9, %v325_v38, %v326_v54  ;;  %v400_v11 = vsel %vm399_vm11, %v397_v57, %v398_v2  ;;  %v1483_v38 = vld [vmem:[%s2174_s1 + $0x5] ss:$8 sm:$0x3] }
 0x1dd   : > { %1275 = vrot.lane.b32.xlu1 %v1273_v29, %s1577_s21  ;;  %v366_v44 = vpop.permute.xlu1 %365  ;;  %v329_v7 = vadd.f32 %v327_v63, %v297_v0  ;;  %v402_v21 = vadd.f32 %v400_v11, %v361_v12  ;;  %v1283_v63 = vld [vmem:[%s1636_s23] sm:$0xff] }
 0x1de   : > { %v367_v62 = vrot.slane %v366_v44, 1  ;;  %v1287_v2 = vld [vmem:[%s1636_s23 + $0x20] sm:$0xff] }
 0x1e0   : > { %v368_v23 = vsel %vm358_vm10, %v366_v44, %v367_v62 }
 0x1e1   : > { %v407_v56 = vpop.permute.xlu1 %406  ;;  %v415_v20 = vpop.permute.xlu0 %414  ;;  %v370_v8 = vadd.f32 %v368_v23, %v329_v7  ;;  %v1288_v23 = vld [vmem:[%s1636_s23 + $0x28] sm:$0xff] }
 0x1e2   : > { %v408_v19 = vrot.slane %v407_v56, 1  ;;  %v416_v4 = vrot.slane %v415_v20, 1 }
 0x1e4   : > { %v409_v32 = vsel %vm399_vm11, %v407_v56, %v408_v19  ;;  %v418_v18 = vsel %vm417_vm12, %v415_v20, %v416_v4  ;;  %v1284_v19 = vld [vmem:[%s1636_s23 + $0x8] sm:$0xff]  ;;  %v1285_v20 = vld [vmem:[%s1636_s23 + $0x10] sm:$0xff] }
 0x1e5   : > { %v411_v14 = vadd.f32 %v409_v32, %v370_v8  ;;  %v420_v40 = vadd.f32 %v418_v18, %v402_v21 }
 0x1e9   : > { %v423_v59 = vpop.permute.xlu1 %422 }
 0x1ea   : > { %v424_v5 = vrot.slane %v423_v59, 1 }
 0x1ec   : > { %v425_v33 = vsel %vm417_vm12, %v423_v59, %v424_v5  ;;  %v1289_v5 = vld [vmem:[%s1636_s23 + $0x30] sm:$0xff] }
 0x1ed   : > { %v427_v45 = vadd.f32 %v425_v33, %v411_v14 }
 0x1ef   : > { %v428_v34 = vadd.f32 %v427_v45, %v420_v40 }
 0x1f1   : > { %v429_v51 = vmul.f32 %v428_v34, %v412_v46 }
 0x22b   : > { %v566_v10 = vpop.permute.xlu0 %565 }
 0x22c   : > { %v567_v15 = vrot.slane %v566_v10, 1 }
 0x22e   : > { %v569_v42 = vsel %vm568_vm13, %v566_v10, %v567_v15 }
 0x22f   : > { %v708_v37 = vpop.permute.xlu1 %707  ;;  %v571_v22 = vmul.f32 %v1423_v30, %v569_v42 }
 0x230   : > { %v709_v3 = vrot.slane %v708_v37, 1 }
 0x231   : > { %v572_v52 = vadd.f32 %v571_v22, %v429_v51 }
 0x232   : > { %v711_v13 = vsel %vm710_vm14, %v708_v37, %v709_v3 }
 0x233   : > { %v713_v39 = vmul.f32 %v1438_v48, %v711_v13 }
 0x235   : > { %v714_v44 = vadd.f32 %v713_v39, %v572_v52 }
 0x237   : > { %v850_v9 = vpop.permute.xlu0 %849 }
 0x238   : > { %v851_v43 = vrot.slane %v850_v9, 1 }
 0x23a   : > { %v853_v36 = vsel %vm852_vm15, %v850_v9, %v851_v43 }
 0x23b   : > { %v855_v29 = vmul.f32 %v1453_v50, %v853_v36 }
 0x23d   : > { %v856_v56 = vadd.f32 %v855_v29, %v714_v44 }
 0x23f   : > { %v992_v41 = vpop.permute.xlu1 %991 }
 0x240   : > { %v993_v47 = vrot.slane %v992_v41, 1 }
 0x242   : > { %v995_v16 = vsel %vm994_vm0, %v992_v41, %v993_v47 }
 0x243   : > { %v997_v55 = vmul.f32 %v1468_v26, %v995_v16 }
 0x245   : > { %v998_v61 = vadd.f32 %v997_v55, %v856_v56 }
 0x247   : > { %v1134_v49 = vpop.permute.xlu0 %1133 }
 0x248   : > { %v1135_v25 = vrot.slane %v1134_v49, 1 }
 0x24a   : > { %v1137_v53 = vsel %vm1136_vm1, %v1134_v49, %v1135_v25 }
 0x24b   : > { %v1139_v54 = vmul.f32 %v1483_v38, %v1137_v53 }
 0x24d   : > { %v1140_v59 = vadd.f32 %v1139_v54, %v998_v61 }
 0x24f   : > { %v1276_v57 = vpop.permute.xlu1 %1275 }
 0x250   : > { %v1277_v60 = vrot.slane %v1276_v57, 1 }
 0x252   : > { %v1279_v62 = vsel %vm1278_vm2, %v1276_v57, %v1277_v60 }
 0x253   : > { %v1281_v27 = vmul.f32 %v1498_v58, %v1279_v62 }
 0x255   : > { %v1282_v0 = vadd.f32 %v1281_v27, %v1140_v59 }
 0x257   : > { %v1295_v7 = vrot.slane %v1282_v0, %v1294_v24  ;;  %v1299_v28 = vrot.slane %v1282_v0, %v1298_v17 }
 0x259   : > { %v1302_v32 = vmul.f32 %v1295_v7, %v1283_v63  ;;  %v1303_v4 = vmul.f32 %v1299_v28, %v1284_v19  ;;  %v1304_v35 = vmul.f32 %v1295_v7, %v1285_v20  ;;  %v1305_v31 = vmul.f32 %v1299_v28, %v1286_v1 }
 0x25a   : > { %v1306_v8 = vmul.f32 %v1295_v7, %v1287_v2  ;;  %v1307_v10 = vmul.f32 %v1299_v28, %v1288_v23  ;;  %v1308_v11 = vmul.f32 %v1295_v7, %v1289_v5  ;;  %v1309_v33 = vmul.f32 %v1299_v28, %v1290_v6 }
 0x25b   : > { %1310 = vst [vmem:[%s184_s16] sm:$0xff] %v1302_v32  ;;  %1311 = vst [vmem:[%s184_s16 + $0x8] sm:$0xff] %v1303_v4 }
 0x25c   : > { %1312 = vst [vmem:[%s184_s16 + $0x10] sm:$0xff] %v1304_v35  ;;  %1313 = vst [vmem:[%s184_s16 + $0x18] sm:$0xff] %v1305_v31 }
 0x25d   : > { %1314 = vst [vmem:[%s184_s16 + $0x20] sm:$0xff] %v1306_v8  ;;  %1315 = vst [vmem:[%s184_s16 + $0x28] sm:$0xff] %v1307_v10 }
 0x25e   : > { %1316 = vst [vmem:[%s184_s16 + $0x30] sm:$0xff] %v1308_v11  ;;  %1317 = vst [vmem:[%s184_s16 + $0x38] sm:$0xff] %v1309_v33 }
 0x25f PF: > { %s14_s12 = sadd.s32 1, %s1562_s12  }
 0x260   : > { %p11_p1 = scmp.ge.s32.totalorder %s14_s12, 4  }
 0x262   :  { %13 = sbr.rel (!%p11_p1) target bundleno = 1 (0x1), region = 74 }
 0x269   :  { %1339 = vsyncpa [#allocation4], 1 }
 0x26a   :  { %1341 = vsyncpa [#allocation4 + $0x1], 1 }

</bundles_post_ra>
